<compile_context>
chip_gen: v6e
topology: v6e:2x2x1
jax: 0.10.0
libtpu: 0.0.40
codegen_flags: <defaults>
</compile_context>

<pallas_src>
import functools

import jax
import jax.numpy as jnp
from jax.experimental import pallas as pl
from jax.experimental.pallas import tpu as pltpu


def _build_border_masks(C, BHW, H, W):
    """Per-tap 'same'-padding validity masks for a lane-packed (C, B*H*W) tile.

    Lane index decodes (H, W powers of two) as:
        ww = pos % W,   hh = (pos // W) % H     (per-image row/col)
    Returns {(dh, dw): bool mask | None}.  The masks also zero any value that
    a circular roll drags across an image boundary inside the packed tile.
    """
    shift_w = W.bit_length() - 1
    pos = jax.lax.broadcasted_iota(jnp.int32, (C, BHW), 1)
    ww = jnp.bitwise_and(pos, W - 1)
    hh = jnp.bitwise_and(jnp.right_shift(pos, shift_w), H - 1)
    top = hh >= 1
    bot = hh <= H - 2
    left = ww >= 1
    right = ww <= W - 2
    masks = {}
    for dh in (-1, 0, 1):
        for dw in (-1, 0, 1):
            m = None
            if dh == -1:
                m = top
            elif dh == 1:
                m = bot
            if dw == -1:
                m = left if m is None else jnp.logical_and(m, left)
            elif dw == 1:
                m = right if m is None else jnp.logical_and(m, right)
            masks[(dh, dw)] = m
    return masks


def _conv3x3_taps(act, w_ref, masks, W, mxu_bf16):
    """3x3 'same' conv on a lane-packed tile via 9 accumulated per-tap dots.

    act   : (C, B*H*W) f32, C % 8 == 0 (sublane aligned)
    w_ref : (9, Cout, C) VMEM ref, tap index t = (kh)*3 + (kw)
    masks : output of _build_border_masks for this C
    returns (Cout, B*H*W) f32
    """
    C, BHW = act.shape
    acc = None
    t = 0
    for dh in (-1, 0, 1):                               # kh = dh + 1
        for dw in (-1, 0, 1):                           # kw = dw + 1
            d = dh * W + dw
            piece = act if d == 0 else pltpu.roll(act, shift=(-d) % BHW, axis=1)
            m = masks[(dh, dw)]
            if m is not None:                           # zero 'same' padding; also
                piece = jnp.where(m, piece, 0.0)        # kills cross-image roll wrap
            if mxu_bf16:                                # cast at MXU boundary only
                piece = piece.astype(jnp.bfloat16)
            w_t = w_ref[t]                              # (Cout, C), static tap index
            part = jnp.dot(w_t, piece, preferred_element_type=jnp.float32)
            acc = part if acc is None else acc + part
            t += 1
    return acc


def _fused_decoder_kernel(x_ref, w1_ref, w2_ref, w3_ref, o_ref, *, H, W, mxu_bf16):
    """conv3x3+relu -> conv3x3+relu -> conv3x3+sigmoid on B lane-packed images."""
    x = x_ref[...]                                       # (CP, B*H*W) f32
    BHW = x.shape[1]

    mask_cache = {}                                      # one mask set per unique C,

    def masks_for(c):                                    # shared by all three layers
        if c not in mask_cache:
            mask_cache[c] = _build_border_masks(c, BHW, H, W)
        return mask_cache[c]

    a1 = jnp.maximum(_conv3x3_taps(x, w1_ref, masks_for(x.shape[0]), W, mxu_bf16), 0.0)
    a2 = jnp.maximum(_conv3x3_taps(a1, w2_ref, masks_for(a1.shape[0]), W, mxu_bf16), 0.0)
    y3 = _conv3x3_taps(a2, w3_ref, masks_for(a2.shape[0]), W, mxu_bf16)   # (8, BHW)
    o_ref[...] = jax.nn.sigmoid(y3[0:1, :]).astype(o_ref.dtype)           # row 0 real


def _decoder_pallas_call(x_cl, w1t, w2t, w3t, H, W, B, mxu_bf16):
    CP, total = x_cl.shape
    BHW = B * H * W
    G = total // BHW
    kernel = functools.partial(_fused_decoder_kernel, H=H, W=W, mxu_bf16=mxu_bf16)
    return pl.pallas_call(
        kernel,
        out_shape=jax.ShapeDtypeStruct((1, total), jnp.float32),
        grid=(G,),
        in_specs=[
            pl.BlockSpec((CP, BHW), lambda g: (0, g)),      # B lane-packed images
            pl.BlockSpec(w1t.shape, lambda g: (0, 0, 0)),   # weights VMEM-resident
            pl.BlockSpec(w2t.shape, lambda g: (0, 0, 0)),
            pl.BlockSpec(w3t.shape, lambda g: (0, 0, 0)),
        ],
        out_specs=pl.BlockSpec((1, BHW), lambda g: (0, g)),
        compiler_params=pltpu.CompilerParams(
            dimension_semantics=("parallel",),   # chunks split across v7x's 2 TCs
        ),
    )(x_cl, w1t, w2t, w3t)


def _conv_w_to_taps(w_hwio, cin_pad, cout_pad=None, dtype=jnp.float32):
    """(3,3,Ci,Co) HWIO -> (9, Co_pad, Ci_pad); tap index t = kh*3 + kw."""
    kh, kw, ci, co = w_hwio.shape
    cout_pad = co if cout_pad is None else cout_pad
    w = jnp.transpose(w_hwio, (0, 1, 3, 2)).reshape(kh * kw, co, ci)   # (9, Co, Ci)
    w = jnp.pad(w, ((0, 0), (0, cout_pad - co), (0, cin_pad - ci)))
    return w.astype(dtype)


def simple_decoder_forward(x_nchw, params, lane_batch=None, mxu_bf16=False):
    """Simple_Decoder: x (N, Cin, H, W) f32 -> (N, 1, 480, 640) f32."""
    N, Cin, H, W = x_nchw.shape
    emb = params["w1"].shape[-1]
    HW = H * W
    CP = (Cin + 7) // 8 * 8            # input channels padded to a sublane tile

    assert emb % 8 == 0, "embedding_size must be a multiple of 8 (sublane tile)"
    assert W & (W - 1) == 0 and H & (H - 1) == 0, "H, W must be powers of two"
    assert HW % 128 == 0, "H*W must be a multiple of 128 (lane tile)"

    # --- lane-batch: how many images share one grid step's lane axis ---------
    if lane_batch is None:
        # Rough live f32 bytes per image per step (double-buffered input, two
        # activation layers, rolled piece + accumulator + output).  Keep the
        # per-step footprint well under v7x's 64 MiB physical VMEM.
        per_img = (2 * CP + 4 * emb + 16) * HW * 4
        lane_batch = max(1, min(N, (8 << 20) // max(per_img, 1)))
        if N >= 2:      # >= 2 grid steps so both v7x TensorCores get work
            lane_batch = min(lane_batch, (N + 1) // 2)
    B = int(lane_batch)
    G = (N + B - 1) // B
    Npad = G * B

    # --- NCHW -> channels-in-sublane / (batch*spatial)-in-lane: (CP, Npad*HW).
    x2 = x_nchw.reshape(N, Cin, HW)
    x2 = jnp.pad(x2, ((0, Npad - N), (0, CP - Cin), (0, 0)))
    x_cl = jnp.transpose(x2, (1, 0, 2)).reshape(CP, Npad * HW)

    # --- per-tap weight tensors, reshaped once and VMEM-resident in-kernel ---
    wdt = jnp.bfloat16 if mxu_bf16 else jnp.float32
    w1t = _conv_w_to_taps(params["w1"], CP, dtype=wdt)                # (9, E, CP)
    w2t = _conv_w_to_taps(params["w2"], emb, dtype=wdt)               # (9, E, E)
    w3t = _conv_w_to_taps(params["w3"], emb, cout_pad=8, dtype=wdt)   # (9, 8, E)

    sal = _decoder_pallas_call(x_cl, w1t, w2t, w3t, H, W, B, mxu_bf16)  # (1, Npad*HW)
    sal = sal.reshape(Npad, H, W)[:N][:, None]                          # (N, 1, H, W)

    # F.interpolate(..., (480, 640), mode='nearest'): src = floor(dst*in/out).
    # Exact integer factors -> pure pixel replication, one fused XLA broadcast.
    # TODO(synk): fusing the x40 lane replication into the kernel store needs a
    # lane-expanding reshape that Mosaic does not lower cleanly; left to XLA.
    OH, OW = 480, 640
    if OH % H == 0 and OW % W == 0:
        fh, fw = OH // H, OW // W
        out = jnp.broadcast_to(sal[:, :, :, None, :, None],
                               (N, 1, H, fh, W, fw)).reshape(N, 1, OH, OW)
    else:
        ih = (jnp.arange(OH) * H) // OH    # exact integer nearest indices
        iw = (jnp.arange(OW) * W) // OW
        out = sal[:, :, ih[:, None], iw[None, :]]
    return out


def _reference_forward(x_nchw, params):
    """Pure-XLA reference (conv_general_dilated) for the correctness check."""
    dn = ("NCHW", "HWIO", "NCHW")

    def conv(x, w):
        return jax.lax.conv_general_dilated(x, w, (1, 1), "SAME",
                                            dimension_numbers=dn)

    x = jax.nn.relu(conv(x_nchw, params["w1"]))
    x = jax.nn.relu(conv(x, params["w2"]))
    x = jax.nn.sigmoid(conv(x, params["w3"]))
    _, _, H, W = x.shape
    ih = (jnp.arange(480) * H) // 480
    iw = (jnp.arange(640) * W) // 640
    return x[:, :, ih[:, None], iw[None, :]]


def init_params(key, input_size, embedding_size):
    """Deterministic synthetic conv weights in HWIO layout (bias=False)."""
    k1, k2, k3 = jax.random.split(key, 3)

    def kaiming(k, shape, fan_in):
        return (jax.random.normal(k, shape, jnp.float32)
                * jnp.sqrt(2.0 / fan_in)).astype(jnp.float32)

    return {
        "w1": kaiming(k1, (3, 3, input_size, embedding_size), 9 * input_size),
        "w2": kaiming(k2, (3, 3, embedding_size, embedding_size), 9 * embedding_size),
        "w3": kaiming(k3, (3, 3, embedding_size, 1), 9 * embedding_size),
    }


if __name__ == "__main__":
    N, CIN, H, W = 2, 4, 16, 16
    EMB = 8

    key = jax.random.PRNGKey(0)
    kx, kp = jax.random.split(key)
    x = jax.random.normal(kx, (N, CIN, H, W), jnp.float32)
    params = init_params(kp, CIN, EMB)

    ref = _reference_forward(x, params)

    # All-f32 path (portable, v5e-safe): tight tolerance.
    fwd = jax.jit(functools.partial(simple_decoder_forward, mxu_bf16=False))
    out = fwd(x, params)
    jax.block_until_ready(out)
    assert out.shape == (N, 1, 480, 640), out.shape
    assert out.dtype == jnp.float32
    assert bool(jnp.all(out >= 0.0)) and bool(jnp.all(out <= 1.0))
    max_err = float(jnp.max(jnp.abs(out - ref)))
    assert max_err < 1e-4, f"f32 path mismatch vs XLA reference: {max_err}"

    # bf16-MXU path (recommended on v6e / v7x): elementwise math stays f32.
    fwd_bf16 = jax.jit(functools.partial(simple_decoder_forward, mxu_bf16=True))
    out_bf16 = fwd_bf16(x, params)
    jax.block_until_ready(out_bf16)
    max_err_bf16 = float(jnp.max(jnp.abs(out_bf16 - ref)))
    assert max_err_bf16 < 2e-2, f"bf16-MXU path mismatch vs reference: {max_err_bf16}"

    print("KERNEL_OK")
</pallas_src>

<mosaic_0001>
module attributes {stable_mosaic.version = 11 : i64} {
  func.func @_fused_decoder_kernel(%arg0: i32, %arg1: memref<8x256xf32, #tpu.memory_space<vmem>>, %arg2: memref<9x8x8xf32, #tpu.memory_space<vmem>>, %arg3: memref<9x8x8xf32, #tpu.memory_space<vmem>>, %arg4: memref<9x8x8xf32, #tpu.memory_space<vmem>>, %arg5: memref<1x256xf32, #tpu.memory_space<vmem>>) attributes {dimension_semantics = [#tpu.dimension_semantics<parallel>], iteration_bounds = array<i64: 2>, scalar_prefetch = 0 : i64, scratch_operands = 0 : i64, tpu.core_type = #tpu.core_type<tc>, window_params = [{transform_indices = @transform_0, window_bounds = array<i64: 8, 256>}, {pipeline_mode = #tpu.pipeline_mode<synchronous>, transform_indices = @transform_1, window_bounds = array<i64: 9, 8, 8>}, {pipeline_mode = #tpu.pipeline_mode<synchronous>, transform_indices = @transform_2, window_bounds = array<i64: 9, 8, 8>}, {pipeline_mode = #tpu.pipeline_mode<synchronous>, transform_indices = @transform_3, window_bounds = array<i64: 9, 8, 8>}, {transform_indices = @transform_4, window_bounds = array<i64: 1, 256>}]} {
    %c0 = arith.constant 0 : index
    %c0_0 = arith.constant 0 : index
    %0 = vector.load %arg1[%c0, %c0_0] : memref<8x256xf32, #tpu.memory_space<vmem>>, vector<8x256xf32>
    %1 = tpu.iota {dimensions = array<i32: 1>} : vector<8x256xi32>
    %c15_i32 = arith.constant 15 : i32
    %2 = vector.broadcast %c15_i32 : i32 to vector<8x256xi32>
    %3 = arith.andi %1, %2 : vector<8x256xi32>
    %c4_i32 = arith.constant 4 : i32
    %4 = vector.broadcast %c4_i32 : i32 to vector<8x256xi32>
    %5 = arith.shrsi %1, %4 : vector<8x256xi32>
    %c15_i32_1 = arith.constant 15 : i32
    %6 = vector.broadcast %c15_i32_1 : i32 to vector<8x256xi32>
    %7 = arith.andi %5, %6 : vector<8x256xi32>
    %c1_i32 = arith.constant 1 : i32
    %8 = vector.broadcast %c1_i32 : i32 to vector<8x256xi32>
    %9 = arith.cmpi sge, %7, %8 : vector<8x256xi32>
    %c14_i32 = arith.constant 14 : i32
    %10 = vector.broadcast %c14_i32 : i32 to vector<8x256xi32>
    %11 = arith.cmpi sle, %7, %10 : vector<8x256xi32>
    %c1_i32_2 = arith.constant 1 : i32
    %12 = vector.broadcast %c1_i32_2 : i32 to vector<8x256xi32>
    %13 = arith.cmpi sge, %3, %12 : vector<8x256xi32>
    %c14_i32_3 = arith.constant 14 : i32
    %14 = vector.broadcast %c14_i32_3 : i32 to vector<8x256xi32>
    %15 = arith.cmpi sle, %3, %14 : vector<8x256xi32>
    %16 = arith.andi %9, %13 : vector<8x256xi1>
    %17 = arith.andi %9, %15 : vector<8x256xi1>
    %18 = arith.andi %11, %13 : vector<8x256xi1>
    %19 = arith.andi %11, %15 : vector<8x256xi1>
    %c17_i32 = arith.constant 17 : i32
    %20 = tpu.dynamic_rotate %0 by %c17_i32 dim 1 : vector<8x256xf32>, i32 -> vector<8x256xf32>
    %cst = arith.constant 0.000000e+00 : f32
    %21 = vector.broadcast %cst : f32 to vector<8x256xf32>
    %22 = arith.select %16, %20, %21 : vector<8x256xi1>, vector<8x256xf32>
    %c0_4 = arith.constant 0 : index
    %c0_5 = arith.constant 0 : index
    %c0_6 = arith.constant 0 : index
    %23 = vector.load %arg2[%c0_4, %c0_5, %c0_6] : memref<9x8x8xf32, #tpu.memory_space<vmem>>, vector<1x8x8xf32>
    %24 = vector.shape_cast %23 : vector<1x8x8xf32> to vector<8x8xf32>
    %cst_7 = arith.constant dense<0.000000e+00> : vector<8x256xf32>
    %25 = tpu.matmul %24, %22, %cst_7 {dimension_numbers = #tpu.dot_dimension_numbers<[1], [0], [0], [1], [0, 0, 1, 1], [], []>} : vector<8x8xf32>, vector<8x256xf32>, vector<8x256xf32> -> vector<8x256xf32>
    %c16_i32 = arith.constant 16 : i32
    %26 = tpu.dynamic_rotate %0 by %c16_i32 dim 1 : vector<8x256xf32>, i32 -> vector<8x256xf32>
    %cst_8 = arith.constant 0.000000e+00 : f32
    %27 = vector.broadcast %cst_8 : f32 to vector<8x256xf32>
    %28 = arith.select %9, %26, %27 : vector<8x256xi1>, vector<8x256xf32>
    %c1 = arith.constant 1 : index
    %c0_9 = arith.constant 0 : index
    %c0_10 = arith.constant 0 : index
    %29 = vector.load %arg2[%c1, %c0_9, %c0_10] : memref<9x8x8xf32, #tpu.memory_space<vmem>>, vector<1x8x8xf32>
    %30 = vector.shape_cast %29 : vector<1x8x8xf32> to vector<8x8xf32>
    %cst_11 = arith.constant dense<0.000000e+00> : vector<8x256xf32>
    %31 = tpu.matmul %30, %28, %cst_11 {dimension_numbers = #tpu.dot_dimension_numbers<[1], [0], [0], [1], [0, 0, 1, 1], [], []>} : vector<8x8xf32>, vector<8x256xf32>, vector<8x256xf32> -> vector<8x256xf32>
    %32 = arith.addf %25, %31 : vector<8x256xf32>
    %c15_i32_12 = arith.constant 15 : i32
    %33 = tpu.dynamic_rotate %0 by %c15_i32_12 dim 1 : vector<8x256xf32>, i32 -> vector<8x256xf32>
    %cst_13 = arith.constant 0.000000e+00 : f32
    %34 = vector.broadcast %cst_13 : f32 to vector<8x256xf32>
    %35 = arith.select %17, %33, %34 : vector<8x256xi1>, vector<8x256xf32>
    %c2 = arith.constant 2 : index
    %c0_14 = arith.constant 0 : index
    %c0_15 = arith.constant 0 : index
    %36 = vector.load %arg2[%c2, %c0_14, %c0_15] : memref<9x8x8xf32, #tpu.memory_space<vmem>>, vector<1x8x8xf32>
    %37 = vector.shape_cast %36 : vector<1x8x8xf32> to vector<8x8xf32>
    %cst_16 = arith.constant dense<0.000000e+00> : vector<8x256xf32>
    %38 = tpu.matmul %37, %35, %cst_16 {dimension_numbers = #tpu.dot_dimension_numbers<[1], [0], [0], [1], [0, 0, 1, 1], [], []>} : vector<8x8xf32>, vector<8x256xf32>, vector<8x256xf32> -> vector<8x256xf32>
    %39 = arith.addf %32, %38 : vector<8x256xf32>
    %c1_i32_17 = arith.constant 1 : i32
    %40 = tpu.dynamic_rotate %0 by %c1_i32_17 dim 1 : vector<8x256xf32>, i32 -> vector<8x256xf32>
    %cst_18 = arith.constant 0.000000e+00 : f32
    %41 = vector.broadcast %cst_18 : f32 to vector<8x256xf32>
    %42 = arith.select %13, %40, %41 : vector<8x256xi1>, vector<8x256xf32>
    %c3 = arith.constant 3 : index
    %c0_19 = arith.constant 0 : index
    %c0_20 = arith.constant 0 : index
    %43 = vector.load %arg2[%c3, %c0_19, %c0_20] : memref<9x8x8xf32, #tpu.memory_space<vmem>>, vector<1x8x8xf32>
    %44 = vector.shape_cast %43 : vector<1x8x8xf32> to vector<8x8xf32>
    %cst_21 = arith.constant dense<0.000000e+00> : vector<8x256xf32>
    %45 = tpu.matmul %44, %42, %cst_21 {dimension_numbers = #tpu.dot_dimension_numbers<[1], [0], [0], [1], [0, 0, 1, 1], [], []>} : vector<8x8xf32>, vector<8x256xf32>, vector<8x256xf32> -> vector<8x256xf32>
    %46 = arith.addf %39, %45 : vector<8x256xf32>
    %c4 = arith.constant 4 : index
    %c0_22 = arith.constant 0 : index
    %c0_23 = arith.constant 0 : index
    %47 = vector.load %arg2[%c4, %c0_22, %c0_23] : memref<9x8x8xf32, #tpu.memory_space<vmem>>, vector<1x8x8xf32>
    %48 = vector.shape_cast %47 : vector<1x8x8xf32> to vector<8x8xf32>
    %cst_24 = arith.constant dense<0.000000e+00> : vector<8x256xf32>
    %49 = tpu.matmul %48, %0, %cst_24 {dimension_numbers = #tpu.dot_dimension_numbers<[1], [0], [0], [1], [0, 0, 1, 1], [], []>} : vector<8x8xf32>, vector<8x256xf32>, vector<8x256xf32> -> vector<8x256xf32>
    %50 = arith.addf %46, %49 : vector<8x256xf32>
    %c255_i32 = arith.constant 255 : i32
    %51 = tpu.dynamic_rotate %0 by %c255_i32 dim 1 : vector<8x256xf32>, i32 -> vector<8x256xf32>
    %cst_25 = arith.constant 0.000000e+00 : f32
    %52 = vector.broadcast %cst_25 : f32 to vector<8x256xf32>
    %53 = arith.select %15, %51, %52 : vector<8x256xi1>, vector<8x256xf32>
    %c5 = arith.constant 5 : index
    %c0_26 = arith.constant 0 : index
    %c0_27 = arith.constant 0 : index
    %54 = vector.load %arg2[%c5, %c0_26, %c0_27] : memref<9x8x8xf32, #tpu.memory_space<vmem>>, vector<1x8x8xf32>
    %55 = vector.shape_cast %54 : vector<1x8x8xf32> to vector<8x8xf32>
    %cst_28 = arith.constant dense<0.000000e+00> : vector<8x256xf32>
    %56 = tpu.matmul %55, %53, %cst_28 {dimension_numbers = #tpu.dot_dimension_numbers<[1], [0], [0], [1], [0, 0, 1, 1], [], []>} : vector<8x8xf32>, vector<8x256xf32>, vector<8x256xf32> -> vector<8x256xf32>
    %57 = arith.addf %50, %56 : vector<8x256xf32>
    %c241_i32 = arith.constant 241 : i32
    %58 = tpu.dynamic_rotate %0 by %c241_i32 dim 1 : vector<8x256xf32>, i32 -> vector<8x256xf32>
    %cst_29 = arith.constant 0.000000e+00 : f32
    %59 = vector.broadcast %cst_29 : f32 to vector<8x256xf32>
    %60 = arith.select %18, %58, %59 : vector<8x256xi1>, vector<8x256xf32>
    %c6 = arith.constant 6 : index
    %c0_30 = arith.constant 0 : index
    %c0_31 = arith.constant 0 : index
    %61 = vector.load %arg2[%c6, %c0_30, %c0_31] : memref<9x8x8xf32, #tpu.memory_space<vmem>>, vector<1x8x8xf32>
    %62 = vector.shape_cast %61 : vector<1x8x8xf32> to vector<8x8xf32>
    %cst_32 = arith.constant dense<0.000000e+00> : vector<8x256xf32>
    %63 = tpu.matmul %62, %60, %cst_32 {dimension_numbers = #tpu.dot_dimension_numbers<[1], [0], [0], [1], [0, 0, 1, 1], [], []>} : vector<8x8xf32>, vector<8x256xf32>, vector<8x256xf32> -> vector<8x256xf32>
    %64 = arith.addf %57, %63 : vector<8x256xf32>
    %c240_i32 = arith.constant 240 : i32
    %65 = tpu.dynamic_rotate %0 by %c240_i32 dim 1 : vector<8x256xf32>, i32 -> vector<8x256xf32>
    %cst_33 = arith.constant 0.000000e+00 : f32
    %66 = vector.broadcast %cst_33 : f32 to vector<8x256xf32>
    %67 = arith.select %11, %65, %66 : vector<8x256xi1>, vector<8x256xf32>
    %c7 = arith.constant 7 : index
    %c0_34 = arith.constant 0 : index
    %c0_35 = arith.constant 0 : index
    %68 = vector.load %arg2[%c7, %c0_34, %c0_35] : memref<9x8x8xf32, #tpu.memory_space<vmem>>, vector<1x8x8xf32>
    %69 = vector.shape_cast %68 : vector<1x8x8xf32> to vector<8x8xf32>
    %cst_36 = arith.constant dense<0.000000e+00> : vector<8x256xf32>
    %70 = tpu.matmul %69, %67, %cst_36 {dimension_numbers = #tpu.dot_dimension_numbers<[1], [0], [0], [1], [0, 0, 1, 1], [], []>} : vector<8x8xf32>, vector<8x256xf32>, vector<8x256xf32> -> vector<8x256xf32>
    %71 = arith.addf %64, %70 : vector<8x256xf32>
    %c239_i32 = arith.constant 239 : i32
    %72 = tpu.dynamic_rotate %0 by %c239_i32 dim 1 : vector<8x256xf32>, i32 -> vector<8x256xf32>
    %cst_37 = arith.constant 0.000000e+00 : f32
    %73 = vector.broadcast %cst_37 : f32 to vector<8x256xf32>
    %74 = arith.select %19, %72, %73 : vector<8x256xi1>, vector<8x256xf32>
    %c8 = arith.constant 8 : index
    %c0_38 = arith.constant 0 : index
    %c0_39 = arith.constant 0 : index
    %75 = vector.load %arg2[%c8, %c0_38, %c0_39] : memref<9x8x8xf32, #tpu.memory_space<vmem>>, vector<1x8x8xf32>
    %76 = vector.shape_cast %75 : vector<1x8x8xf32> to vector<8x8xf32>
    %cst_40 = arith.constant dense<0.000000e+00> : vector<8x256xf32>
    %77 = tpu.matmul %76, %74, %cst_40 {dimension_numbers = #tpu.dot_dimension_numbers<[1], [0], [0], [1], [0, 0, 1, 1], [], []>} : vector<8x8xf32>, vector<8x256xf32>, vector<8x256xf32> -> vector<8x256xf32>
    %78 = arith.addf %71, %77 : vector<8x256xf32>
    %cst_41 = arith.constant 0.000000e+00 : f32
    %79 = vector.broadcast %cst_41 : f32 to vector<8x256xf32>
    %80 = arith.maximumf %78, %79 : vector<8x256xf32>
    %c17_i32_42 = arith.constant 17 : i32
    %81 = tpu.dynamic_rotate %80 by %c17_i32_42 dim 1 : vector<8x256xf32>, i32 -> vector<8x256xf32>
    %cst_43 = arith.constant 0.000000e+00 : f32
    %82 = vector.broadcast %cst_43 : f32 to vector<8x256xf32>
    %83 = arith.select %16, %81, %82 : vector<8x256xi1>, vector<8x256xf32>
    %c0_44 = arith.constant 0 : index
    %c0_45 = arith.constant 0 : index
    %c0_46 = arith.constant 0 : index
    %84 = vector.load %arg3[%c0_44, %c0_45, %c0_46] : memref<9x8x8xf32, #tpu.memory_space<vmem>>, vector<1x8x8xf32>
    %85 = vector.shape_cast %84 : vector<1x8x8xf32> to vector<8x8xf32>
    %cst_47 = arith.constant dense<0.000000e+00> : vector<8x256xf32>
    %86 = tpu.matmul %85, %83, %cst_47 {dimension_numbers = #tpu.dot_dimension_numbers<[1], [0], [0], [1], [0, 0, 1, 1], [], []>} : vector<8x8xf32>, vector<8x256xf32>, vector<8x256xf32> -> vector<8x256xf32>
    %c16_i32_48 = arith.constant 16 : i32
    %87 = tpu.dynamic_rotate %80 by %c16_i32_48 dim 1 : vector<8x256xf32>, i32 -> vector<8x256xf32>
    %cst_49 = arith.constant 0.000000e+00 : f32
    %88 = vector.broadcast %cst_49 : f32 to vector<8x256xf32>
    %89 = arith.select %9, %87, %88 : vector<8x256xi1>, vector<8x256xf32>
    %c1_50 = arith.constant 1 : index
    %c0_51 = arith.constant 0 : index
    %c0_52 = arith.constant 0 : index
    %90 = vector.load %arg3[%c1_50, %c0_51, %c0_52] : memref<9x8x8xf32, #tpu.memory_space<vmem>>, vector<1x8x8xf32>
    %91 = vector.shape_cast %90 : vector<1x8x8xf32> to vector<8x8xf32>
    %cst_53 = arith.constant dense<0.000000e+00> : vector<8x256xf32>
    %92 = tpu.matmul %91, %89, %cst_53 {dimension_numbers = #tpu.dot_dimension_numbers<[1], [0], [0], [1], [0, 0, 1, 1], [], []>} : vector<8x8xf32>, vector<8x256xf32>, vector<8x256xf32> -> vector<8x256xf32>
    %93 = arith.addf %86, %92 : vector<8x256xf32>
    %c15_i32_54 = arith.constant 15 : i32
    %94 = tpu.dynamic_rotate %80 by %c15_i32_54 dim 1 : vector<8x256xf32>, i32 -> vector<8x256xf32>
    %cst_55 = arith.constant 0.000000e+00 : f32
    %95 = vector.broadcast %cst_55 : f32 to vector<8x256xf32>
    %96 = arith.select %17, %94, %95 : vector<8x256xi1>, vector<8x256xf32>
    %c2_56 = arith.constant 2 : index
    %c0_57 = arith.constant 0 : index
    %c0_58 = arith.constant 0 : index
    %97 = vector.load %arg3[%c2_56, %c0_57, %c0_58] : memref<9x8x8xf32, #tpu.memory_space<vmem>>, vector<1x8x8xf32>
    %98 = vector.shape_cast %97 : vector<1x8x8xf32> to vector<8x8xf32>
    %cst_59 = arith.constant dense<0.000000e+00> : vector<8x256xf32>
    %99 = tpu.matmul %98, %96, %cst_59 {dimension_numbers = #tpu.dot_dimension_numbers<[1], [0], [0], [1], [0, 0, 1, 1], [], []>} : vector<8x8xf32>, vector<8x256xf32>, vector<8x256xf32> -> vector<8x256xf32>
    %100 = arith.addf %93, %99 : vector<8x256xf32>
    %c1_i32_60 = arith.constant 1 : i32
    %101 = tpu.dynamic_rotate %80 by %c1_i32_60 dim 1 : vector<8x256xf32>, i32 -> vector<8x256xf32>
    %cst_61 = arith.constant 0.000000e+00 : f32
    %102 = vector.broadcast %cst_61 : f32 to vector<8x256xf32>
    %103 = arith.select %13, %101, %102 : vector<8x256xi1>, vector<8x256xf32>
    %c3_62 = arith.constant 3 : index
    %c0_63 = arith.constant 0 : index
    %c0_64 = arith.constant 0 : index
    %104 = vector.load %arg3[%c3_62, %c0_63, %c0_64] : memref<9x8x8xf32, #tpu.memory_space<vmem>>, vector<1x8x8xf32>
    %105 = vector.shape_cast %104 : vector<1x8x8xf32> to vector<8x8xf32>
    %cst_65 = arith.constant dense<0.000000e+00> : vector<8x256xf32>
    %106 = tpu.matmul %105, %103, %cst_65 {dimension_numbers = #tpu.dot_dimension_numbers<[1], [0], [0], [1], [0, 0, 1, 1], [], []>} : vector<8x8xf32>, vector<8x256xf32>, vector<8x256xf32> -> vector<8x256xf32>
    %107 = arith.addf %100, %106 : vector<8x256xf32>
    %c4_66 = arith.constant 4 : index
    %c0_67 = arith.constant 0 : index
    %c0_68 = arith.constant 0 : index
    %108 = vector.load %arg3[%c4_66, %c0_67, %c0_68] : memref<9x8x8xf32, #tpu.memory_space<vmem>>, vector<1x8x8xf32>
    %109 = vector.shape_cast %108 : vector<1x8x8xf32> to vector<8x8xf32>
    %cst_69 = arith.constant dense<0.000000e+00> : vector<8x256xf32>
    %110 = tpu.matmul %109, %80, %cst_69 {dimension_numbers = #tpu.dot_dimension_numbers<[1], [0], [0], [1], [0, 0, 1, 1], [], []>} : vector<8x8xf32>, vector<8x256xf32>, vector<8x256xf32> -> vector<8x256xf32>
    %111 = arith.addf %107, %110 : vector<8x256xf32>
    %c255_i32_70 = arith.constant 255 : i32
    %112 = tpu.dynamic_rotate %80 by %c255_i32_70 dim 1 : vector<8x256xf32>, i32 -> vector<8x256xf32>
    %cst_71 = arith.constant 0.000000e+00 : f32
    %113 = vector.broadcast %cst_71 : f32 to vector<8x256xf32>
    %114 = arith.select %15, %112, %113 : vector<8x256xi1>, vector<8x256xf32>
    %c5_72 = arith.constant 5 : index
    %c0_73 = arith.constant 0 : index
    %c0_74 = arith.constant 0 : index
    %115 = vector.load %arg3[%c5_72, %c0_73, %c0_74] : memref<9x8x8xf32, #tpu.memory_space<vmem>>, vector<1x8x8xf32>
    %116 = vector.shape_cast %115 : vector<1x8x8xf32> to vector<8x8xf32>
    %cst_75 = arith.constant dense<0.000000e+00> : vector<8x256xf32>
    %117 = tpu.matmul %116, %114, %cst_75 {dimension_numbers = #tpu.dot_dimension_numbers<[1], [0], [0], [1], [0, 0, 1, 1], [], []>} : vector<8x8xf32>, vector<8x256xf32>, vector<8x256xf32> -> vector<8x256xf32>
    %118 = arith.addf %111, %117 : vector<8x256xf32>
    %c241_i32_76 = arith.constant 241 : i32
    %119 = tpu.dynamic_rotate %80 by %c241_i32_76 dim 1 : vector<8x256xf32>, i32 -> vector<8x256xf32>
    %cst_77 = arith.constant 0.000000e+00 : f32
    %120 = vector.broadcast %cst_77 : f32 to vector<8x256xf32>
    %121 = arith.select %18, %119, %120 : vector<8x256xi1>, vector<8x256xf32>
    %c6_78 = arith.constant 6 : index
    %c0_79 = arith.constant 0 : index
    %c0_80 = arith.constant 0 : index
    %122 = vector.load %arg3[%c6_78, %c0_79, %c0_80] : memref<9x8x8xf32, #tpu.memory_space<vmem>>, vector<1x8x8xf32>
    %123 = vector.shape_cast %122 : vector<1x8x8xf32> to vector<8x8xf32>
    %cst_81 = arith.constant dense<0.000000e+00> : vector<8x256xf32>
    %124 = tpu.matmul %123, %121, %cst_81 {dimension_numbers = #tpu.dot_dimension_numbers<[1], [0], [0], [1], [0, 0, 1, 1], [], []>} : vector<8x8xf32>, vector<8x256xf32>, vector<8x256xf32> -> vector<8x256xf32>
    %125 = arith.addf %118, %124 : vector<8x256xf32>
    %c240_i32_82 = arith.constant 240 : i32
    %126 = tpu.dynamic_rotate %80 by %c240_i32_82 dim 1 : vector<8x256xf32>, i32 -> vector<8x256xf32>
    %cst_83 = arith.constant 0.000000e+00 : f32
    %127 = vector.broadcast %cst_83 : f32 to vector<8x256xf32>
    %128 = arith.select %11, %126, %127 : vector<8x256xi1>, vector<8x256xf32>
    %c7_84 = arith.constant 7 : index
    %c0_85 = arith.constant 0 : index
    %c0_86 = arith.constant 0 : index
    %129 = vector.load %arg3[%c7_84, %c0_85, %c0_86] : memref<9x8x8xf32, #tpu.memory_space<vmem>>, vector<1x8x8xf32>
    %130 = vector.shape_cast %129 : vector<1x8x8xf32> to vector<8x8xf32>
    %cst_87 = arith.constant dense<0.000000e+00> : vector<8x256xf32>
    %131 = tpu.matmul %130, %128, %cst_87 {dimension_numbers = #tpu.dot_dimension_numbers<[1], [0], [0], [1], [0, 0, 1, 1], [], []>} : vector<8x8xf32>, vector<8x256xf32>, vector<8x256xf32> -> vector<8x256xf32>
    %132 = arith.addf %125, %131 : vector<8x256xf32>
    %c239_i32_88 = arith.constant 239 : i32
    %133 = tpu.dynamic_rotate %80 by %c239_i32_88 dim 1 : vector<8x256xf32>, i32 -> vector<8x256xf32>
    %cst_89 = arith.constant 0.000000e+00 : f32
    %134 = vector.broadcast %cst_89 : f32 to vector<8x256xf32>
    %135 = arith.select %19, %133, %134 : vector<8x256xi1>, vector<8x256xf32>
    %c8_90 = arith.constant 8 : index
    %c0_91 = arith.constant 0 : index
    %c0_92 = arith.constant 0 : index
    %136 = vector.load %arg3[%c8_90, %c0_91, %c0_92] : memref<9x8x8xf32, #tpu.memory_space<vmem>>, vector<1x8x8xf32>
    %137 = vector.shape_cast %136 : vector<1x8x8xf32> to vector<8x8xf32>
    %cst_93 = arith.constant dense<0.000000e+00> : vector<8x256xf32>
    %138 = tpu.matmul %137, %135, %cst_93 {dimension_numbers = #tpu.dot_dimension_numbers<[1], [0], [0], [1], [0, 0, 1, 1], [], []>} : vector<8x8xf32>, vector<8x256xf32>, vector<8x256xf32> -> vector<8x256xf32>
    %139 = arith.addf %132, %138 : vector<8x256xf32>
    %cst_94 = arith.constant 0.000000e+00 : f32
    %140 = vector.broadcast %cst_94 : f32 to vector<8x256xf32>
    %141 = arith.maximumf %139, %140 : vector<8x256xf32>
    %c17_i32_95 = arith.constant 17 : i32
    %142 = tpu.dynamic_rotate %141 by %c17_i32_95 dim 1 : vector<8x256xf32>, i32 -> vector<8x256xf32>
    %cst_96 = arith.constant 0.000000e+00 : f32
    %143 = vector.broadcast %cst_96 : f32 to vector<8x256xf32>
    %144 = arith.select %16, %142, %143 : vector<8x256xi1>, vector<8x256xf32>
    %c0_97 = arith.constant 0 : index
    %c0_98 = arith.constant 0 : index
    %c0_99 = arith.constant 0 : index
    %145 = vector.load %arg4[%c0_97, %c0_98, %c0_99] : memref<9x8x8xf32, #tpu.memory_space<vmem>>, vector<1x8x8xf32>
    %146 = vector.shape_cast %145 : vector<1x8x8xf32> to vector<8x8xf32>
    %cst_100 = arith.constant dense<0.000000e+00> : vector<8x256xf32>
    %147 = tpu.matmul %146, %144, %cst_100 {dimension_numbers = #tpu.dot_dimension_numbers<[1], [0], [0], [1], [0, 0, 1, 1], [], []>} : vector<8x8xf32>, vector<8x256xf32>, vector<8x256xf32> -> vector<8x256xf32>
    %c16_i32_101 = arith.constant 16 : i32
    %148 = tpu.dynamic_rotate %141 by %c16_i32_101 dim 1 : vector<8x256xf32>, i32 -> vector<8x256xf32>
    %cst_102 = arith.constant 0.000000e+00 : f32
    %149 = vector.broadcast %cst_102 : f32 to vector<8x256xf32>
    %150 = arith.select %9, %148, %149 : vector<8x256xi1>, vector<8x256xf32>
    %c1_103 = arith.constant 1 : index
    %c0_104 = arith.constant 0 : index
    %c0_105 = arith.constant 0 : index
    %151 = vector.load %arg4[%c1_103, %c0_104, %c0_105] : memref<9x8x8xf32, #tpu.memory_space<vmem>>, vector<1x8x8xf32>
    %152 = vector.shape_cast %151 : vector<1x8x8xf32> to vector<8x8xf32>
    %cst_106 = arith.constant dense<0.000000e+00> : vector<8x256xf32>
    %153 = tpu.matmul %152, %150, %cst_106 {dimension_numbers = #tpu.dot_dimension_numbers<[1], [0], [0], [1], [0, 0, 1, 1], [], []>} : vector<8x8xf32>, vector<8x256xf32>, vector<8x256xf32> -> vector<8x256xf32>
    %154 = arith.addf %147, %153 : vector<8x256xf32>
    %c15_i32_107 = arith.constant 15 : i32
    %155 = tpu.dynamic_rotate %141 by %c15_i32_107 dim 1 : vector<8x256xf32>, i32 -> vector<8x256xf32>
    %cst_108 = arith.constant 0.000000e+00 : f32
    %156 = vector.broadcast %cst_108 : f32 to vector<8x256xf32>
    %157 = arith.select %17, %155, %156 : vector<8x256xi1>, vector<8x256xf32>
    %c2_109 = arith.constant 2 : index
    %c0_110 = arith.constant 0 : index
    %c0_111 = arith.constant 0 : index
    %158 = vector.load %arg4[%c2_109, %c0_110, %c0_111] : memref<9x8x8xf32, #tpu.memory_space<vmem>>, vector<1x8x8xf32>
    %159 = vector.shape_cast %158 : vector<1x8x8xf32> to vector<8x8xf32>
    %cst_112 = arith.constant dense<0.000000e+00> : vector<8x256xf32>
    %160 = tpu.matmul %159, %157, %cst_112 {dimension_numbers = #tpu.dot_dimension_numbers<[1], [0], [0], [1], [0, 0, 1, 1], [], []>} : vector<8x8xf32>, vector<8x256xf32>, vector<8x256xf32> -> vector<8x256xf32>
    %161 = arith.addf %154, %160 : vector<8x256xf32>
    %c1_i32_113 = arith.constant 1 : i32
    %162 = tpu.dynamic_rotate %141 by %c1_i32_113 dim 1 : vector<8x256xf32>, i32 -> vector<8x256xf32>
    %cst_114 = arith.constant 0.000000e+00 : f32
    %163 = vector.broadcast %cst_114 : f32 to vector<8x256xf32>
    %164 = arith.select %13, %162, %163 : vector<8x256xi1>, vector<8x256xf32>
    %c3_115 = arith.constant 3 : index
    %c0_116 = arith.constant 0 : index
    %c0_117 = arith.constant 0 : index
    %165 = vector.load %arg4[%c3_115, %c0_116, %c0_117] : memref<9x8x8xf32, #tpu.memory_space<vmem>>, vector<1x8x8xf32>
    %166 = vector.shape_cast %165 : vector<1x8x8xf32> to vector<8x8xf32>
    %cst_118 = arith.constant dense<0.000000e+00> : vector<8x256xf32>
    %167 = tpu.matmul %166, %164, %cst_118 {dimension_numbers = #tpu.dot_dimension_numbers<[1], [0], [0], [1], [0, 0, 1, 1], [], []>} : vector<8x8xf32>, vector<8x256xf32>, vector<8x256xf32> -> vector<8x256xf32>
    %168 = arith.addf %161, %167 : vector<8x256xf32>
    %c4_119 = arith.constant 4 : index
    %c0_120 = arith.constant 0 : index
    %c0_121 = arith.constant 0 : index
    %169 = vector.load %arg4[%c4_119, %c0_120, %c0_121] : memref<9x8x8xf32, #tpu.memory_space<vmem>>, vector<1x8x8xf32>
    %170 = vector.shape_cast %169 : vector<1x8x8xf32> to vector<8x8xf32>
    %cst_122 = arith.constant dense<0.000000e+00> : vector<8x256xf32>
    %171 = tpu.matmul %170, %141, %cst_122 {dimension_numbers = #tpu.dot_dimension_numbers<[1], [0], [0], [1], [0, 0, 1, 1], [], []>} : vector<8x8xf32>, vector<8x256xf32>, vector<8x256xf32> -> vector<8x256xf32>
    %172 = arith.addf %168, %171 : vector<8x256xf32>
    %c255_i32_123 = arith.constant 255 : i32
    %173 = tpu.dynamic_rotate %141 by %c255_i32_123 dim 1 : vector<8x256xf32>, i32 -> vector<8x256xf32>
    %cst_124 = arith.constant 0.000000e+00 : f32
    %174 = vector.broadcast %cst_124 : f32 to vector<8x256xf32>
    %175 = arith.select %15, %173, %174 : vector<8x256xi1>, vector<8x256xf32>
    %c5_125 = arith.constant 5 : index
    %c0_126 = arith.constant 0 : index
    %c0_127 = arith.constant 0 : index
    %176 = vector.load %arg4[%c5_125, %c0_126, %c0_127] : memref<9x8x8xf32, #tpu.memory_space<vmem>>, vector<1x8x8xf32>
    %177 = vector.shape_cast %176 : vector<1x8x8xf32> to vector<8x8xf32>
    %cst_128 = arith.constant dense<0.000000e+00> : vector<8x256xf32>
    %178 = tpu.matmul %177, %175, %cst_128 {dimension_numbers = #tpu.dot_dimension_numbers<[1], [0], [0], [1], [0, 0, 1, 1], [], []>} : vector<8x8xf32>, vector<8x256xf32>, vector<8x256xf32> -> vector<8x256xf32>
    %179 = arith.addf %172, %178 : vector<8x256xf32>
    %c241_i32_129 = arith.constant 241 : i32
    %180 = tpu.dynamic_rotate %141 by %c241_i32_129 dim 1 : vector<8x256xf32>, i32 -> vector<8x256xf32>
    %cst_130 = arith.constant 0.000000e+00 : f32
    %181 = vector.broadcast %cst_130 : f32 to vector<8x256xf32>
    %182 = arith.select %18, %180, %181 : vector<8x256xi1>, vector<8x256xf32>
    %c6_131 = arith.constant 6 : index
    %c0_132 = arith.constant 0 : index
    %c0_133 = arith.constant 0 : index
    %183 = vector.load %arg4[%c6_131, %c0_132, %c0_133] : memref<9x8x8xf32, #tpu.memory_space<vmem>>, vector<1x8x8xf32>
    %184 = vector.shape_cast %183 : vector<1x8x8xf32> to vector<8x8xf32>
    %cst_134 = arith.constant dense<0.000000e+00> : vector<8x256xf32>
    %185 = tpu.matmul %184, %182, %cst_134 {dimension_numbers = #tpu.dot_dimension_numbers<[1], [0], [0], [1], [0, 0, 1, 1], [], []>} : vector<8x8xf32>, vector<8x256xf32>, vector<8x256xf32> -> vector<8x256xf32>
    %186 = arith.addf %179, %185 : vector<8x256xf32>
    %c240_i32_135 = arith.constant 240 : i32
    %187 = tpu.dynamic_rotate %141 by %c240_i32_135 dim 1 : vector<8x256xf32>, i32 -> vector<8x256xf32>
    %cst_136 = arith.constant 0.000000e+00 : f32
    %188 = vector.broadcast %cst_136 : f32 to vector<8x256xf32>
    %189 = arith.select %11, %187, %188 : vector<8x256xi1>, vector<8x256xf32>
    %c7_137 = arith.constant 7 : index
    %c0_138 = arith.constant 0 : index
    %c0_139 = arith.constant 0 : index
    %190 = vector.load %arg4[%c7_137, %c0_138, %c0_139] : memref<9x8x8xf32, #tpu.memory_space<vmem>>, vector<1x8x8xf32>
    %191 = vector.shape_cast %190 : vector<1x8x8xf32> to vector<8x8xf32>
    %cst_140 = arith.constant dense<0.000000e+00> : vector<8x256xf32>
    %192 = tpu.matmul %191, %189, %cst_140 {dimension_numbers = #tpu.dot_dimension_numbers<[1], [0], [0], [1], [0, 0, 1, 1], [], []>} : vector<8x8xf32>, vector<8x256xf32>, vector<8x256xf32> -> vector<8x256xf32>
    %193 = arith.addf %186, %192 : vector<8x256xf32>
    %c239_i32_141 = arith.constant 239 : i32
    %194 = tpu.dynamic_rotate %141 by %c239_i32_141 dim 1 : vector<8x256xf32>, i32 -> vector<8x256xf32>
    %cst_142 = arith.constant 0.000000e+00 : f32
    %195 = vector.broadcast %cst_142 : f32 to vector<8x256xf32>
    %196 = arith.select %19, %194, %195 : vector<8x256xi1>, vector<8x256xf32>
    %c8_143 = arith.constant 8 : index
    %c0_144 = arith.constant 0 : index
    %c0_145 = arith.constant 0 : index
    %197 = vector.load %arg4[%c8_143, %c0_144, %c0_145] : memref<9x8x8xf32, #tpu.memory_space<vmem>>, vector<1x8x8xf32>
    %198 = vector.shape_cast %197 : vector<1x8x8xf32> to vector<8x8xf32>
    %cst_146 = arith.constant dense<0.000000e+00> : vector<8x256xf32>
    %199 = tpu.matmul %198, %196, %cst_146 {dimension_numbers = #tpu.dot_dimension_numbers<[1], [0], [0], [1], [0, 0, 1, 1], [], []>} : vector<8x8xf32>, vector<8x256xf32>, vector<8x256xf32> -> vector<8x256xf32>
    %200 = arith.addf %193, %199 : vector<8x256xf32>
    %201 = vector.extract_strided_slice %200 {offsets = [0, 0], sizes = [1, 256], strides = [1, 1]} : vector<8x256xf32> to vector<1x256xf32>
    %202 = arith.negf %201 : vector<1x256xf32>
    %203 = math.exp %202 : vector<1x256xf32>
    %cst_147 = arith.constant 1.000000e+00 : f32
    %204 = vector.broadcast %cst_147 : f32 to vector<1x256xf32>
    %205 = arith.addf %204, %203 : vector<1x256xf32>
    %206 = arith.divf %204, %205 : vector<1x256xf32>
    %c0_148 = arith.constant 0 : index
    %c0_149 = arith.constant 0 : index
    %207 = vector.load %arg5[%c0_148, %c0_149] : memref<1x256xf32, #tpu.memory_space<vmem>>, vector<1x256xf32>
    tpu.vector_store %arg5[%c0_148, %c0_149], %206 {strides = array<i32>} : memref<1x256xf32, #tpu.memory_space<vmem>>, vector<1x256xf32>,
    return
  }
  func.func @transform_0(%arg0: i32) -> (i32, i32) {
    %c0_i32 = arith.constant 0 : i32
    %c0_i32_0 = arith.constant 0 : i32
    return %c0_i32, %arg0 : i32, i32
  }
  func.func @transform_1(%arg0: i32) -> (i32, i32, i32) {
    %c0_i32 = arith.constant 0 : i32
    %c0_i32_0 = arith.constant 0 : i32
    %c0_i32_1 = arith.constant 0 : i32
    %c0_i32_2 = arith.constant 0 : i32
    return %c0_i32, %c0_i32_0, %c0_i32_1 : i32, i32, i32
  }
  func.func @transform_2(%arg0: i32) -> (i32, i32, i32) {
    %c0_i32 = arith.constant 0 : i32
    %c0_i32_0 = arith.constant 0 : i32
    %c0_i32_1 = arith.constant 0 : i32
    %c0_i32_2 = arith.constant 0 : i32
    return %c0_i32, %c0_i32_0, %c0_i32_1 : i32, i32, i32
  }
  func.func @transform_3(%arg0: i32) -> (i32, i32, i32) {
    %c0_i32 = arith.constant 0 : i32
    %c0_i32_0 = arith.constant 0 : i32
    %c0_i32_1 = arith.constant 0 : i32
    %c0_i32_2 = arith.constant 0 : i32
    return %c0_i32, %c0_i32_0, %c0_i32_1 : i32, i32, i32
  }
  func.func @transform_4(%arg0: i32) -> (i32, i32) {
    %c0_i32 = arith.constant 0 : i32
    %c0_i32_0 = arith.constant 0 : i32
    return %c0_i32, %arg0 : i32, i32
  }
}

</mosaic_0001>

<bundles_post_ra>
// kernel: simple_decoder_forward.1
= control target key start
LH: loop header
LB: loop body
LE: loop exit
PB: predicated region body
PF: predicated region fallthrough
CT: control target
= control target key end

     0   :  { %s2787_s15 = smov 0   ;;  %s3309_s0 = inlined_call_operand.vmem [shape: f32[8,512], index: 0, kind: input, shape index: {}]   ;;  %s3310_s1 = inlined_call_operand.vmem [shape: f32[9,8,8], index: 1, kind: input, shape index: {}]   ;;  %s3311_s2 = inlined_call_operand.vmem [shape: f32[9,8,8], index: 2, kind: input, shape index: {}]   ;;  %s3312_s3 = inlined_call_operand.vmem [shape: f32[9,8,8], index: 3, kind: input, shape index: {}]   ;;  %s3313_s4 = inlined_call_operand.vmem [shape: f32[1,512], index: 4, kind: output, shape index: {}]  }
   0x1 LB: > { %s2607_s16 = sadd.s32 4294967295, %s2750_s15   ;;  %p2611_p0 = scmp.ge.s32.totalorder %s2750_s15, 1  ;;  %s2750_s15 = sphi %s2787_s15, %s14_s15  }
   0x2   : > { %p163_p1 = scmp.lt.s32.totalorder %s2750_s15, 3 }
   0x4   : > { %p164_p2 = pnand %p2611_p0, %p163_p1 }
   0x5   : > { %s2612_s17 = sshll.u32 (!%p164_p2), %s2607_s16, 1  ;;  %s2753_s22 = smov (!%p164_p2), 17  }
   0x6   : > { %167 = sbr.rel (%p164_p2) target bundleno = 1087 (0x43f), region = 36  ;;  %p189_p3 = scmp.lt.s32.totalorder (!%p164_p2), %s2612_s17, 3 }
   0x7   : > { %s2754_s23 = smov (!%p164_p2), 16   ;;  %s2755_s24 = smov (!%p164_p2), 15  }
   0x8   : > { %s2756_s25 = smov (!%p164_p2), 1   ;;  %s2757_s26 = smov (!%p164_p2), 127  }
   0x9   : > { %s2758_s27 = smov (!%p164_p2), 113   ;;  %s2759_s28 = smov (!%p164_p2), 112  }
   0xa   : > { %s2760_s29 = smov (!%p164_p2), 111  }
   0xb   : > { %s3414_s17 = smov (!%p189_p3, %s2612_s17), 3  ;;  %v2752_v0 = vmov 0.0   ;;  %v201_v3 = vlaneseq  ;;  %vm3326_vm9 = vcmask 64512   ;;  %v2615_v26 = vld [vmem:[%s3310_s1 + $0x8] sm:$0xff]  ;;  %v235_v27 = vld [vmem:[%s3310_s1] sm:$0xff]  ;;  %v2622_v34 = vld [vmem:[%s3310_s1 + $0x10] sm:$0xff] }
   0xc   : > { %315 = vmatprep.mubr.f32.mxu0 %v2752_v0  ;;  %389 = vmatprep.mubr.f32.mxu1 %v2752_v0  ;;  %s2613_s18 = sshll.u32 %s3414_s17, 3  ;;  %v2626_v39 = vld [vmem:[%s3310_s1 + $0x18] sm:$0xff]  ;;  %v2630_v40 = vld [vmem:[%s3310_s1 + $0x20] sm:$0xff]  ;;  %v2632_v45 = vld [vmem:[%s3310_s1 + $0x28] sm:$0xff]  ;;  %v3351_v58 = vmov 0  ;;  %v3353_v61 = vmov 0  ;;  %s197_s30 = scalar_lea.vmem %s3313_s4, %s3414_s17 }
   0xd   : > { %s192_s21 = scalar_lea.vmem %s3309_s0, %s2613_s18  ;;  %v2840_v4 = vand.u32 127, %v201_v3  ;;  %v2636_v52 = vld [vmem:[%s3310_s1 + $0x30] sm:$0xff]  ;;  %v2640_v57 = vld [vmem:[%s3310_s1 + $0x38] sm:$0xff]  ;;  %v2696_v28 = vld [vmem:[%s3312_s3 + $0x20] sm:$0xff] }
   0xe   : > { %v2803_v1 = vld [vmem:[%s192_s21] sm:$0xff]  ;;  %v2809_v2 = vld [vmem:[%s192_s21 + $0x8] sm:$0xff] }
   0xf   : > { %226 = vrot.lane.b32.xlu1 %v2803_v1, %s2753_s22  ;;  %236 = vrot.lane.b32.xlu0 %v2803_v1, %s2754_s23  ;;  %v203_v5 = vadd.s32 128, %v2840_v4  ;;  %v206_v7 = vshra.s32 %v2840_v4, 4  ;;  %v204_v11 = vand.u32 15, %v2840_v4  ;;  %vm3321_vm4 = vcmp.lt.s32.totalorder %v2840_v4, 16  ;;  %v2698_v14 = vld [vmem:[%s3312_s3 + $0x28] sm:$0xff] }
  0x10   : > { %vm3316_vm5 = vcmp.lt.s32.totalorder %v2840_v4, 17  ;;  %vm3315_vm11 = vcmp.lt.s32.totalorder %v2840_v4, 15  ;;  %vm3314_vm14 = vcmp.lt.s32.totalorder %v2840_v4, 1  ;;  %vm3317_vm15 = vcmp.lt.s32.totalorder %v2840_v4, 127 }
  0x11   : > { %v207_v6 = vshra.s32 %v203_v5, 4  ;;  %v205_v9 = vand.u32 15, %v203_v5  ;;  %v2846_v10 = vand.u32 15, %v206_v7  ;;  %vm2855_vm3 = vcmp.ge.s32.totalorder %v204_v11, 1 }
  0x12   : > { %vm2881_vm10 = vcmp.le.s32.totalorder %v204_v11, 14 }
  0x13   : > { %228 = vrot.lane.b32.xlu1 %v2809_v2, %s2753_s22  ;;  %238 = vrot.lane.b32.xlu0 %v2809_v2, %s2754_s23  ;;  %v2844_v8 = vand.u32 15, %v207_v6  ;;  %vm2850_vm1 = vcmp.ge.s32.totalorder %v205_v9, 1  ;;  %vm3318_vm2 = vcmp.ge.s32.totalorder %v2846_v10, 1  ;;  %vm2877_vm8 = vcmp.le.s32.totalorder %v205_v9, 14 }
  0x14   : > { %vm2873_vm7 = vmand %vm3318_vm2, %vm2855_vm3 }
  0x15   : > { %vm3319_vm0 = vcmp.ge.s32.totalorder %v2844_v8, 1  ;;  %vm2921_vm13 = vmand %vm3318_vm2, %vm2881_vm10 }
  0x16   : > { %vm2865_vm6 = vmand %vm3319_vm0, %vm2850_vm1 }
  0x17   : > { %398 = vrot.lane.b32.xlu1 %v2809_v2, %s2755_s24  ;;  %396 = vrot.lane.b32.xlu0 %v2803_v1, %s2755_s24  ;;  %vm2912_vm12 = vmand %vm3319_vm0, %vm2877_vm8 }
  0x1b   : > { %485 = vrot.lane.b32.xlu1 %v2809_v2, %s2756_s25  ;;  %483 = vrot.lane.b32.xlu0 %v2803_v1, %s2756_s25 }
  0x1f   : > { %650 = vrot.lane.b32.xlu1 %v2809_v2, %s2757_s26  ;;  %648 = vrot.lane.b32.xlu0 %v2803_v1, %s2757_s26 }
  0x23   : > { %737 = vrot.lane.b32.xlu1 %v2809_v2, %s2758_s27  ;;  %735 = vrot.lane.b32.xlu0 %v2803_v1, %s2758_s27 }
  0x27   : > { %824 = vrot.lane.b32.xlu1 %v2809_v2, %s2759_s28  ;;  %822 = vrot.lane.b32.xlu0 %v2803_v1, %s2759_s28 }
  0x2b   : > { %911 = vrot.lane.b32.xlu1 %v2809_v2, %s2760_s29  ;;  %909 = vrot.lane.b32.xlu0 %v2803_v1, %s2760_s29 }
  0x81   : > { %v227_v12 = vpop.permute.xlu1 %226  ;;  %v237_v13 = vpop.permute.xlu0 %236 }
  0x85   : > { %v229_v17 = vpop.permute.xlu1 %228  ;;  %v239_v18 = vpop.permute.xlu0 %238 }
  0x86   : > { %v241_v22 = vsel %vm3321_vm4, %v237_v13, %v239_v18  ;;  %v231_v23 = vsel %vm3316_vm5, %v227_v12, %v229_v17  ;;  %v242_v24 = vsel %vm3321_vm4, %v239_v18, %v237_v13  ;;  %v232_v25 = vsel %vm3316_vm5, %v229_v17, %v227_v12 }
  0x87   : > { %2616 = vmatprep.subr.msk.mxu0 %vm3319_vm0, %v241_v22  ;;  %2619 = vmatprep.subr.msk.mxu1 %vm2865_vm6, %v231_v23  ;;  %vm3320_vm5 = vcmp.lt.s32.totalorder %v2840_v4, 113  ;;  %vm3322_vm0 = vcmp.lt.s32.totalorder %v2840_v4, 112 }
  0x88   : > { %2617 = vmatpush1.msk.msra.mxu0 %vm3318_vm2, %v242_v24  ;;  %2620 = vmatpush1.msk.msra.mxu1 %vm2873_vm7, %v232_v25 }
  0x89   : > { %v399_v29 = vpop.permute.xlu1 %398  ;;  %v397_v30 = vpop.permute.xlu0 %396  ;;  %2618 = vmatmul.mubr.msk.f32.vlgmr.msra.gmra.mxu0 %vm3326_vm9, %v2615_v26  ;;  %2621 = vmatmul.mubr.msk.f32.vlgmr.msra.gmra.mxu1 %vm3326_vm9, %v235_v27 }
  0x8a   : > { %v401_v32 = vsel %vm3315_vm11, %v397_v30, %v399_v29  ;;  %v402_v33 = vsel %vm3315_vm11, %v399_v29, %v397_v30  ;;  %474 = vmatprep.mubr.f32.mxu0 %v2752_v0  ;;  %561 = vmatprep.mubr.f32.mxu1 %v2752_v0  ;;  %vm3324_vm11 = vcmp.le.s32.totalorder %v2846_v10, 14 }
  0x8b   : > { %2623 = vmatprep.subr.msk.mxu0 %vm2912_vm12, %v401_v32  ;;  %vm2990_vm2 = vmand %vm3324_vm11, %vm2855_vm3 }
  0x8c   : > { %2624 = vmatpush1.msk.msra.mxu0 %vm2921_vm13, %v402_v33 }
  0x8d   : > { %v486_v35 = vpop.permute.xlu1 %485  ;;  %v484_v36 = vpop.permute.xlu0 %483  ;;  %2625 = vmatmul.mubr.msk.f32.vlgmr.msra.gmra.mxu0 %vm3326_vm9, %v2622_v34  ;;  %605 = vmatprep.subr.mxu0 %v2809_v2 }
  0x8e   : > { %v488_v37 = vsel %vm3314_vm14, %v484_v36, %v486_v35  ;;  %v489_v38 = vsel %vm3314_vm14, %v486_v35, %v484_v36  ;;  %606 = vmatpush1.msra.mxu0 %v2803_v1  ;;  %639 = vmatprep.mubr.f32.mxu0 %v2752_v0  ;;  %vm3325_vm14 = vcmp.le.s32.totalorder %v2844_v8, 14  ;;  %v2644_v1 = vld [vmem:[%s3310_s1 + $0x40] sm:$0xff] }
  0x8f   : > { %2627 = vmatprep.subr.msk.mxu1 %vm2850_vm1, %v488_v37  ;;  %vm3025_vm4 = vmand %vm3325_vm14, %vm2877_vm8 }
  0x90   : > { %2628 = vmatpush1.msk.msra.mxu1 %vm2855_vm3, %v489_v38  ;;  %v3352_v58 = vsel %vm3025_vm4, 4294967295, %v3351_v58 }
  0x91   : > { %v651_v41 = vpop.permute.xlu1 %650  ;;  %v649_v42 = vpop.permute.xlu0 %648  ;;  %2629 = vmatmul.mubr.msk.f32.vlgmr.msra.gmra.mxu1 %vm3326_vm9, %v2626_v39  ;;  %2631 = vmatmul.mubr.msk.f32.vlgmr.msra.gmra.mxu0 %vm3326_vm9, %v2630_v40 }
  0x92   : > { %v653_v43 = vsel %vm3317_vm15, %v649_v42, %v651_v41  ;;  %v654_v44 = vsel %vm3317_vm15, %v651_v41, %v649_v42  ;;  %726 = vmatprep.mubr.f32.mxu1 %v2752_v0  ;;  %813 = vmatprep.mubr.f32.mxu0 %v2752_v0  ;;  %vm2981_vm15 = vmand %vm3325_vm14, %vm2850_vm1 }
  0x93   : > { %2633 = vmatprep.subr.msk.mxu1 %vm2877_vm8, %v654_v44 }
  0x94   : > { %2634 = vmatpush1.msk.msra.mxu1 %vm2881_vm10, %v653_v43 }
  0x95   : > { %v738_v47 = vpop.permute.xlu1 %737  ;;  %v736_v48 = vpop.permute.xlu0 %735  ;;  %2635 = vmatmul.mubr.msk.f32.vlgmr.msra.gmra.mxu1 %vm3326_vm9, %v2632_v45 }
  0x96   : > { %v740_v50 = vsel %vm3320_vm5, %v736_v48, %v738_v47  ;;  %v741_v51 = vsel %vm3320_vm5, %v738_v47, %v736_v48  ;;  %900 = vmatprep.mubr.f32.mxu1 %v2752_v0  ;;  %vm3323_vm5 = vcmp.lt.s32.totalorder %v2840_v4, 111 }
  0x97   : > { %2637 = vmatprep.subr.msk.mxu0 %vm2981_vm15, %v741_v51 }
  0x98   : > { %2638 = vmatpush1.msk.msra.mxu0 %vm2990_vm2, %v740_v50 }
  0x99   : > { %v825_v53 = vpop.permute.xlu1 %824  ;;  %2639 = vmatmul.mubr.msk.f32.vlgmr.msra.gmra.mxu0 %vm3326_vm9, %v2636_v52  ;;  %v823_v54 = vpop.permute.xlu0 %822 }
  0x9a   : > { %v827_v55 = vsel %vm3322_vm0, %v823_v54, %v825_v53  ;;  %v828_v56 = vsel %vm3322_vm0, %v825_v53, %v823_v54  ;;  %987 = vmatprep.mubr.f32.mxu0 %v2752_v0  ;;  %vm3034_vm0 = vmand %vm3324_vm11, %vm2881_vm10 }
  0x9b   : > { %2641 = vmatprep.subr.msk.mxu1 %vm3325_vm14, %v828_v56  ;;  %v3354_v61 = vsel %vm3034_vm0, 4294967295, %v3353_v61  ;;  %v2648_v56 = vld [vmem:[%s3311_s2 + $0x8] sm:$0xff]  ;;  %vm3357_vm14 = vcmp.ge.s32.totalorder %v2844_v8, 1 }
  0x9c   : > { %2642 = vmatpush1.msk.msra.mxu1 %vm3324_vm11, %v827_v55 }
  0x9d   : > { %v912_v59 = vpop.permute.xlu1 %911  ;;  %2643 = vmatmul.mubr.msk.f32.vlgmr.msra.gmra.mxu1 %vm3326_vm9, %v2640_v57  ;;  %v910_v60 = vpop.permute.xlu0 %909 }
  0x9e   : > { %v914_v62 = vsel %vm3323_vm5, %v910_v60, %v912_v59  ;;  %v915_v63 = vsel %vm3323_vm5, %v912_v59, %v910_v60  ;;  %1084 = vmatprep.mubr.f32.mxu1 %v2752_v0  ;;  %vm3355_vm5 = vcmp.lt.s32.totalorder %v2840_v4, 16 }
  0x9f   : > { %2645 = vmatprep.subr.msk.mxu0 %vm3025_vm4, %v915_v63  ;;  %vm3356_vm11 = vmmov %vm3355_vm5  ;;  %vm3360_vm4 = vcmp.lt.s32.totalorder %v2840_v4, 17  ;;  %v1006_v63 = vld [vmem:[%s3311_s2] sm:$0xff] }
  0xa0   : > { %2646 = vmatpush1.msk.msra.mxu0 %vm3034_vm0, %v914_v62  ;;  %vm3359_vm0 = vcmask 64512  }
  0xa1   : > { %2647 = vmatmul.mubr.msk.f32.vlgmr.msra.gmra.mxu0 %vm3326_vm9, %v2644_v1  ;;  %vm3358_vm9 = vcmp.ge.s32.totalorder %v2846_v10, 1 }
  0xa2   : > { %1158 = vmatprep.mubr.f32.mxu0 %v2752_v0 }
 0x149   : > { %v317_v2 = vpop.f32.mrf.mxu0  ;;  %v391_v5 = vpop.f32.mrf.mxu1 }
 0x14a   : > { %v392_v6 = vadd.f32 %v391_v5, %v317_v2 }
 0x14b   : > { %v319_v7 = vpop.f32.mrf.mxu0  ;;  %v393_v9 = vpop.f32.mrf.mxu1 }
 0x14c   : > { %v394_v11 = vadd.f32 %v393_v9, %v319_v7  ;;  %v2655_v7 = vld [vmem:[%s3311_s2 + $0x10] sm:$0xff] }
 0x14d   : > { %v476_v12 = vpop.f32.mrf.mxu0 }
 0x14e   : > { %v481_v13 = vadd.f32 %v476_v12, %v392_v6 }
 0x14f   : > { %v478_v17 = vpop.f32.mrf.mxu0 }
 0x150   : > { %v482_v18 = vadd.f32 %v478_v17, %v394_v11  ;;  %v2659_v17 = vld [vmem:[%s3311_s2 + $0x18] sm:$0xff] }
 0x151   : > { %v563_v22 = vpop.f32.mrf.mxu1  ;;  %v641_v23 = vpop.f32.mrf.mxu0 }
 0x152   : > { %v568_v24 = vadd.f32 %v563_v22, %v481_v13 }
 0x153   : > { %v565_v25 = vpop.f32.mrf.mxu1  ;;  %v643_v29 = vpop.f32.mrf.mxu0 }
 0x154   : > { %v569_v26 = vadd.f32 %v565_v25, %v482_v18  ;;  %v646_v27 = vadd.f32 %v641_v23, %v568_v24  ;;  %v2663_v18 = vld [vmem:[%s3311_s2 + $0x20] sm:$0xff] }
 0x155   : > { %v728_v30 = vpop.f32.mrf.mxu1 }
 0x156   : > { %v647_v32 = vadd.f32 %v643_v29, %v569_v26  ;;  %v733_v33 = vadd.f32 %v728_v30, %v646_v27  ;;  %v2665_v26 = vld [vmem:[%s3311_s2 + $0x28] sm:$0xff] }
 0x157   : > { %v730_v34 = vpop.f32.mrf.mxu1 }
 0x158   : > { %v734_v36 = vadd.f32 %v730_v34, %v647_v32 }
 0x159   : > { %v815_v35 = vpop.f32.mrf.mxu0 }
 0x15a   : > { %v820_v37 = vadd.f32 %v815_v35, %v733_v33  ;;  %v2669_v33 = vld [vmem:[%s3311_s2 + $0x30] sm:$0xff] }
 0x15b   : > { %v817_v38 = vpop.f32.mrf.mxu0 }
 0x15c   : > { %v821_v41 = vadd.f32 %v817_v38, %v734_v36  ;;  %v2673_v38 = vld [vmem:[%s3311_s2 + $0x38] sm:$0xff] }
 0x15d   : > { %v902_v39 = vpop.f32.mrf.mxu1 }
 0x15e   : > { %v907_v42 = vadd.f32 %v902_v39, %v820_v37 }
 0x15f   : > { %v904_v40 = vpop.f32.mrf.mxu1 }
 0x160   : > { %v908_v44 = vadd.f32 %v904_v40, %v821_v41 }
 0x161   : > { %v989_v43 = vpop.f32.mrf.mxu0 }
 0x162   : > { %v994_v45 = vadd.f32 %v989_v43, %v907_v42  ;;  %v2677_v43 = vld [vmem:[%s3311_s2 + $0x40] sm:$0xff] }
 0x163   : > { %v991_v47 = vpop.f32.mrf.mxu0 }
 0x164   : > { %v996_v48 = vmax.f32 %v994_v45, 0.0  ;;  %v995_v50 = vadd.f32 %v991_v47, %v908_v44 }
 0x166   : > { %v997_v51 = vmax.f32 %v995_v50, 0.0  ;;  %1007 = vrot.lane.b32.xlu0 %v996_v48, %s2754_s23 }
 0x168   : > { %1009 = vrot.lane.b32.xlu1 %v997_v51, %s2754_s23 }
 0x16a   : > { %998 = vrot.lane.b32.xlu0 %v996_v48, %s2753_s22 }
 0x16c   : > { %1000 = vrot.lane.b32.xlu1 %v997_v51, %s2753_s22 }
 0x16e   : > { %1165 = vrot.lane.b32.xlu0 %v996_v48, %s2755_s24 }
 0x170   : > { %1167 = vrot.lane.b32.xlu1 %v997_v51, %s2755_s24 }
 0x172   : > { %1251 = vrot.lane.b32.xlu0 %v996_v48, %s2756_s25 }
 0x174   : > { %1253 = vrot.lane.b32.xlu1 %v997_v51, %s2756_s25 }
 0x176   : > { %1415 = vrot.lane.b32.xlu0 %v996_v48, %s2757_s26 }
 0x178   : > { %1417 = vrot.lane.b32.xlu1 %v997_v51, %s2757_s26 }
 0x17a   : > { %1501 = vrot.lane.b32.xlu0 %v996_v48, %s2758_s27 }
 0x17c   : > { %1503 = vrot.lane.b32.xlu1 %v997_v51, %s2758_s27 }
 0x17e   : > { %1587 = vrot.lane.b32.xlu0 %v996_v48, %s2759_s28 }
 0x180   : > { %1589 = vrot.lane.b32.xlu1 %v997_v51, %s2759_s28 }
 0x182   : > { %1673 = vrot.lane.b32.xlu0 %v996_v48, %s2760_s29 }
 0x184   : > { %1675 = vrot.lane.b32.xlu1 %v997_v51, %s2760_s29 }
 0x1d8   : > { %v1008_v52 = vpop.permute.xlu0 %1007 }
 0x1da   : > { %v1010_v53 = vpop.permute.xlu1 %1009 }
 0x1db   : > { %v1011_v54 = vsel %vm3355_vm5, %v1008_v52, %v1010_v53  ;;  %v1012_v55 = vsel %vm3356_vm11, %v1010_v53, %v1008_v52  ;;  %vm3361_vm5 = vmmov %vm3360_vm4 }
 0x1dc   : > { %v999_v57 = vpop.permute.xlu0 %998  ;;  %2649 = vmatprep.subr.msk.mxu1 %vm3357_vm14, %v1011_v54  ;;  %vm3364_vm11 = vmmov %vm3359_vm0  ;;  %vm3365_vm14 = vcmp.lt.s32.totalorder %v2840_v4, 1 }
 0x1dd   : > { %2650 = vmatpush1.msk.msra.mxu1 %vm3358_vm9, %v1012_v55 }
 0x1de   : > { %v1001_v59 = vpop.permute.xlu1 %1000  ;;  %2651 = vmatmul.mubr.msk.f32.vlgmr.msra.gmra.mxu1 %vm3359_vm0, %v2648_v56 }
 0x1df   : > { %v1002_v60 = vsel %vm3360_vm4, %v999_v57, %v1001_v59  ;;  %v1003_v62 = vsel %vm3361_vm5, %v1001_v59, %v999_v57  ;;  %1242 = vmatprep.mubr.f32.mxu1 %v2752_v0  ;;  %vm3362_vm4 = vcmp.lt.s32.totalorder %v2840_v4, 15  ;;  %vm3366_vm5 = vmmov %vm3365_vm14 }
 0x1e0   : > { %v1166_v1 = vpop.permute.xlu0 %1165  ;;  %2652 = vmatprep.subr.msk.mxu0 %vm2865_vm6, %v1002_v60  ;;  %vm3363_vm9 = vmmov %vm3362_vm4 }
 0x1e1   : > { %2653 = vmatpush1.msk.msra.mxu0 %vm2873_vm7, %v1003_v62 }
 0x1e2   : > { %v1168_v2 = vpop.permute.xlu1 %1167  ;;  %2654 = vmatmul.mubr.msk.f32.vlgmr.msra.gmra.mxu0 %vm3359_vm0, %v1006_v63 }
 0x1e3   : > { %v1169_v5 = vsel %vm3362_vm4, %v1166_v1, %v1168_v2  ;;  %v1170_v6 = vsel %vm3363_vm9, %v1168_v2, %v1166_v1  ;;  %1328 = vmatprep.mubr.f32.mxu0 %v2752_v0  ;;  %vm3367_vm4 = vmmov %vm3359_vm0  ;;  %vm3368_vm9 = vcmp.lt.s32.totalorder %v2840_v4, 127 }
 0x1e4   : > { %v1252_v9 = vpop.permute.xlu0 %1251  ;;  %2656 = vmatprep.subr.msk.mxu1 %vm2912_vm12, %v1169_v5 }
 0x1e5   : > { %2657 = vmatpush1.msk.msra.mxu1 %vm2921_vm13, %v1170_v6 }
 0x1e6   : > { %1372 = vmatprep.subr.mxu1 %v997_v51  ;;  %v1254_v11 = vpop.permute.xlu1 %1253  ;;  %2658 = vmatmul.mubr.msk.f32.vlgmr.msra.gmra.mxu1 %vm3364_vm11, %v2655_v7  ;;  %vm3369_vm11 = vmmov %vm3368_vm9 }
 0x1e7   : > { %v1255_v12 = vsel %vm3365_vm14, %v1252_v9, %v1254_v11  ;;  %v1256_v13 = vsel %vm3366_vm5, %v1254_v11, %v1252_v9  ;;  %1373 = vmatpush1.msra.mxu1 %v996_v48  ;;  %1406 = vmatprep.mubr.f32.mxu1 %v2752_v0  ;;  %vm3370_vm14 = vmmov %vm3359_vm0  ;;  %vm3371_vm5 = vcmp.lt.s32.totalorder %v2840_v4, 113 }
 0x1e8   : > { %v1416_v22 = vpop.permute.xlu0 %1415  ;;  %2660 = vmatprep.subr.msk.mxu0 %vm2850_vm1, %v1255_v12 }
 0x1e9   : > { %2661 = vmatpush1.msk.msra.mxu0 %vm2855_vm3, %v1256_v13 }
 0x1ea   : > { %v1418_v23 = vpop.permute.xlu1 %1417  ;;  %2662 = vmatmul.mubr.msk.f32.vlgmr.msra.gmra.mxu0 %vm3359_vm0, %v2659_v17  ;;  %2664 = vmatmul.mubr.msk.f32.vlgmr.msra.gmra.mxu1 %vm3367_vm4, %v2663_v18  ;;  %vm3372_vm0 = vmmov %vm3371_vm5 }
 0x1eb   : > { %v1419_v24 = vsel %vm3368_vm9, %v1416_v22, %v1418_v23  ;;  %v1420_v25 = vsel %vm3369_vm11, %v1418_v23, %v1416_v22  ;;  %1492 = vmatprep.mubr.f32.mxu0 %v2752_v0  ;;  %1578 = vmatprep.mubr.f32.mxu1 %v2752_v0  ;;  %vm3373_vm9 = vcmp.lt.s32.totalorder %v2840_v4, 112 }
 0x1ec   : > { %v1502_v27 = vpop.permute.xlu0 %1501  ;;  %2666 = vmatprep.subr.msk.mxu0 %vm2877_vm8, %v1420_v25  ;;  %vm3374_vm11 = vmmov %vm3373_vm9 }
 0x1ed   : > { %2667 = vmatpush1.msk.msra.mxu0 %vm2881_vm10, %v1419_v24 }
 0x1ee   : > { %v1504_v29 = vpop.permute.xlu1 %1503  ;;  %2668 = vmatmul.mubr.msk.f32.vlgmr.msra.gmra.mxu0 %vm3370_vm14, %v2665_v26  ;;  %vm3375_vm14 = vcmp.le.s32.totalorder %v2844_v8, 14 }
 0x1ef   : > { %v1505_v30 = vsel %vm3371_vm5, %v1502_v27, %v1504_v29  ;;  %v1506_v32 = vsel %vm3372_vm0, %v1504_v29, %v1502_v27  ;;  %1664 = vmatprep.mubr.f32.mxu0 %v2752_v0  ;;  %vm3376_vm5 = vcmp.le.s32.totalorder %v2846_v10, 14  ;;  %vm3377_vm0 = vmmov %vm3367_vm4 }
 0x1f0   : > { %v1588_v34 = vpop.permute.xlu0 %1587  ;;  %2670 = vmatprep.subr.msk.mxu1 %vm2981_vm15, %v1506_v32 }
 0x1f1   : > { %2671 = vmatpush1.msk.msra.mxu1 %vm2990_vm2, %v1505_v30 }
 0x1f2   : > { %2672 = vmatmul.mubr.msk.f32.vlgmr.msra.gmra.mxu1 %vm3367_vm4, %v2669_v33  ;;  %v1590_v35 = vpop.permute.xlu1 %1589  ;;  %vm3378_vm4 = vcmp.lt.s32.totalorder %v2840_v4, 111 }
 0x1f3   : > { %v1591_v36 = vsel %vm3373_vm9, %v1588_v34, %v1590_v35  ;;  %v1592_v37 = vsel %vm3374_vm11, %v1590_v35, %v1588_v34  ;;  %1750 = vmatprep.mubr.f32.mxu1 %v2752_v0  ;;  %vm3379_vm9 = vmmov %vm3378_vm4  ;;  %vm3380_vm11 = vnez %v3352_v58 }
 0x1f4   : > { %2674 = vmatprep.subr.msk.mxu0 %vm3375_vm14, %v1592_v37  ;;  %v1674_v39 = vpop.permute.xlu0 %1673  ;;  %vm3381_vm14 = vnez %v3354_v61  ;;  %v2681_v37 = vld [vmem:[%s3312_s3 + $0x8] sm:$0xff] }
 0x1f5   : > { %2675 = vmatpush1.msk.msra.mxu0 %vm3376_vm5, %v1591_v36  ;;  %vm3382_vm5 = vmmov %vm3377_vm0 }
 0x1f6   : > { %2676 = vmatmul.mubr.msk.f32.vlgmr.msra.gmra.mxu0 %vm3377_vm0, %v2673_v38  ;;  %v1676_v40 = vpop.permute.xlu1 %1675  ;;  %vm3383_vm0 = vcmp.lt.s32.totalorder %v2840_v4, 16 }
 0x1f7   : > { %v1677_v41 = vsel %vm3378_vm4, %v1674_v39, %v1676_v40  ;;  %v1678_v42 = vsel %vm3379_vm9, %v1676_v40, %v1674_v39  ;;  %1847 = vmatprep.mubr.f32.mxu0 %v2752_v0  ;;  %vm3384_vm4 = vmmov %vm3383_vm0  ;;  %vm3385_vm9 = vcmp.ge.s32.totalorder %v2844_v8, 1 }
 0x1f8   : > { %2678 = vmatprep.subr.msk.mxu1 %vm3380_vm11, %v1678_v42  ;;  %vm3388_vm11 = vcmp.lt.s32.totalorder %v2840_v4, 17  ;;  %v1769_v42 = vld [vmem:[%s3312_s3] sm:$0xff] }
 0x1f9   : > { %2679 = vmatpush1.msk.msra.mxu1 %vm3381_vm14, %v1677_v41  ;;  %vm3387_vm14 = vcmask 64512  }
 0x1fa   : > { %2680 = vmatmul.mubr.msk.f32.vlgmr.msra.gmra.mxu1 %vm3382_vm5, %v2677_v43  ;;  %vm3386_vm5 = vcmp.ge.s32.totalorder %v2846_v10, 1 }
 0x1fb   : > { %1921 = vmatprep.mubr.f32.mxu1 %v2752_v0 }
 0x29e   : > { %v1086_v44 = vpop.f32.mrf.mxu1 }
 0x2a0   : > { %v1088_v45 = vpop.f32.mrf.mxu1 }
 0x2a2   : > { %v1160_v47 = vpop.f32.mrf.mxu0 }
 0x2a3   : > { %v1161_v48 = vadd.f32 %v1160_v47, %v1086_v44 }
 0x2a4   : > { %v1162_v50 = vpop.f32.mrf.mxu0 }
 0x2a5   : > { %v1163_v51 = vadd.f32 %v1162_v50, %v1088_v45 }
 0x2a6   : > { %v1244_v52 = vpop.f32.mrf.mxu1 }
 0x2a7   : > { %v1249_v53 = vadd.f32 %v1244_v52, %v1161_v48  ;;  %v2688_v48 = vld [vmem:[%s3312_s3 + $0x10] sm:$0xff]  ;;  %v2692_v52 = vld [vmem:[%s3312_s3 + $0x18] sm:$0xff] }
 0x2a8   : > { %v1246_v54 = vpop.f32.mrf.mxu1 }
 0x2a9   : > { %v1250_v55 = vadd.f32 %v1246_v54, %v1163_v51 }
 0x2aa   : > { %v1330_v56 = vpop.f32.mrf.mxu0  ;;  %v1408_v57 = vpop.f32.mrf.mxu1 }
 0x2ab   : > { %v1335_v59 = vadd.f32 %v1330_v56, %v1249_v53 }
 0x2ac   : > { %v1332_v60 = vpop.f32.mrf.mxu0  ;;  %v1410_v1 = vpop.f32.mrf.mxu1 }
 0x2ad   : > { %v1336_v62 = vadd.f32 %v1332_v60, %v1250_v55  ;;  %v1413_v63 = vadd.f32 %v1408_v57, %v1335_v59  ;;  %v2702_v60 = vld [vmem:[%s3312_s3 + $0x30] sm:$0xff] }
 0x2ae   : > { %v1494_v2 = vpop.f32.mrf.mxu0 }
 0x2af   : > { %v1414_v5 = vadd.f32 %v1410_v1, %v1336_v62  ;;  %v1499_v6 = vadd.f32 %v1494_v2, %v1413_v63  ;;  %v2706_v1 = vld [vmem:[%s3312_s3 + $0x38] sm:$0xff] }
 0x2b0   : > { %v1496_v7 = vpop.f32.mrf.mxu0 }
 0x2b1   : > { %v1500_v11 = vadd.f32 %v1496_v7, %v1414_v5 }
 0x2b2   : > { %v1580_v9 = vpop.f32.mrf.mxu1 }
 0x2b3   : > { %v1585_v12 = vadd.f32 %v1580_v9, %v1499_v6 }
 0x2b4   : > { %v1582_v13 = vpop.f32.mrf.mxu1 }
 0x2b5   : > { %v1586_v22 = vadd.f32 %v1582_v13, %v1500_v11 }
 0x2b6   : > { %v1666_v17 = vpop.f32.mrf.mxu0 }
 0x2b7   : > { %v1671_v23 = vadd.f32 %v1666_v17, %v1585_v12 }
 0x2b8   : > { %v1668_v18 = vpop.f32.mrf.mxu0 }
 0x2b9   : > { %v1672_v25 = vadd.f32 %v1668_v18, %v1586_v22 }
 0x2ba   : > { %v1752_v24 = vpop.f32.mrf.mxu1 }
 0x2bb   : > { %v1757_v26 = vadd.f32 %v1752_v24, %v1671_v23 }
 0x2bc   : > { %v1754_v27 = vpop.f32.mrf.mxu1 }
 0x2bd   : > { %v1759_v29 = vmax.f32 %v1757_v26, 0.0  ;;  %v1758_v30 = vadd.f32 %v1754_v27, %v1672_v25 }
 0x2bf   : > { %v1760_v32 = vmax.f32 %v1758_v30, 0.0  ;;  %1770 = vrot.lane.b32.xlu0 %v1759_v29, %s2754_s23 }
 0x2c1   : > { %1772 = vrot.lane.b32.xlu1 %v1760_v32, %s2754_s23 }
 0x2c3   : > { %1761 = vrot.lane.b32.xlu0 %v1759_v29, %s2753_s22 }
 0x2c5   : > { %1763 = vrot.lane.b32.xlu1 %v1760_v32, %s2753_s22 }
 0x2c7   : > { %1928 = vrot.lane.b32.xlu0 %v1759_v29, %s2755_s24 }
 0x2c9   : > { %1930 = vrot.lane.b32.xlu1 %v1760_v32, %s2755_s24 }
 0x2cb   : > { %2014 = vrot.lane.b32.xlu0 %v1759_v29, %s2756_s25 }
 0x2cd   : > { %2016 = vrot.lane.b32.xlu1 %v1760_v32, %s2756_s25 }
 0x2cf   : > { %2178 = vrot.lane.b32.xlu0 %v1759_v29, %s2757_s26 }
 0x2d1   : > { %2180 = vrot.lane.b32.xlu1 %v1760_v32, %s2757_s26 }
 0x2d3   : > { %2264 = vrot.lane.b32.xlu0 %v1759_v29, %s2758_s27 }
 0x2d5   : > { %2266 = vrot.lane.b32.xlu1 %v1760_v32, %s2758_s27 }
 0x2d7   : > { %2350 = vrot.lane.b32.xlu0 %v1759_v29, %s2759_s28 }
 0x2d9   : > { %2352 = vrot.lane.b32.xlu1 %v1760_v32, %s2759_s28 }
 0x2db   : > { %2436 = vrot.lane.b32.xlu0 %v1759_v29, %s2760_s29 }
 0x2dd   : > { %2438 = vrot.lane.b32.xlu1 %v1760_v32, %s2760_s29 }
 0x331   : > { %v1771_v33 = vpop.permute.xlu0 %1770 }
 0x333   : > { %v1773_v34 = vpop.permute.xlu1 %1772 }
 0x334   : > { %v1774_v35 = vsel %vm3383_vm0, %v1771_v33, %v1773_v34  ;;  %v1775_v36 = vsel %vm3384_vm4, %v1773_v34, %v1771_v33  ;;  %vm3389_vm0 = vmmov %vm3388_vm11 }
 0x335   : > { %v1762_v38 = vpop.permute.xlu0 %1761  ;;  %2682 = vmatprep.subr.msk.mxu0 %vm3385_vm9, %v1774_v35 }
 0x336   : > { %2683 = vmatpush1.msk.msra.mxu0 %vm3386_vm5, %v1775_v36  ;;  %vm3397_vm5 = vcmp.lt.s32.totalorder %v2840_v4, 127 }
 0x337   : > { %v1764_v39 = vpop.permute.xlu1 %1763  ;;  %2684 = vmatmul.mubr.msk.f32.vlgmr.msra.gmra.mxu0 %vm3387_vm14, %v2681_v37 }
 0x338   : > { %v1765_v40 = vsel %vm3388_vm11, %v1762_v38, %v1764_v39  ;;  %v1766_v41 = vsel %vm3389_vm0, %v1764_v39, %v1762_v38  ;;  %2005 = vmatprep.mubr.f32.mxu0 %v2752_v0  ;;  %vm3390_vm11 = vcmp.lt.s32.totalorder %v2840_v4, 15  ;;  %vm3398_vm0 = vmmov %vm3397_vm5 }
 0x339   : > { %v1929_v43 = vpop.permute.xlu0 %1928  ;;  %2685 = vmatprep.subr.msk.mxu1 %vm2865_vm6, %v1765_v40  ;;  %vm3391_vm4 = vmmov %vm3390_vm11 }
 0x33a   : > { %2686 = vmatpush1.msk.msra.mxu1 %vm2873_vm7, %v1766_v41  ;;  %vm3392_vm6 = vmmov %vm3387_vm14  ;;  %vm3393_vm7 = vcmp.lt.s32.totalorder %v2840_v4, 1 }
 0x33b   : > { %v1931_v44 = vpop.permute.xlu1 %1930  ;;  %2687 = vmatmul.mubr.msk.f32.vlgmr.msra.gmra.mxu1 %vm3387_vm14, %v1769_v42  ;;  %vm3394_vm9 = vmmov %vm3393_vm7 }
 0x33c   : > { %v1932_v45 = vsel %vm3390_vm11, %v1929_v43, %v1931_v44  ;;  %v1933_v47 = vsel %vm3391_vm4, %v1931_v44, %v1929_v43  ;;  %2091 = vmatprep.mubr.f32.mxu1 %v2752_v0 }
 0x33d   : > { %v2015_v16 = vpop.permute.xlu0 %2014  ;;  %2689 = vmatprep.subr.msk.mxu0 %vm2912_vm12, %v1932_v45  ;;  %vm3395_vm12 = vmmov %vm3392_vm6 }
 0x33e   : > { %2690 = vmatpush1.msk.msra.mxu0 %vm2921_vm13, %v1933_v47  ;;  %vm3396_vm13 = vmmov %vm3392_vm6 }
 0x33f   : > { %2135 = vmatprep.subr.mxu0 %v1760_v32  ;;  %v2017_v19 = vpop.permute.xlu1 %2016  ;;  %2691 = vmatmul.mubr.msk.f32.vlgmr.msra.gmra.mxu0 %vm3392_vm6, %v2688_v48 }
 0x340   : > { %v2018_v50 = vsel %vm3393_vm7, %v2015_v16, %v2017_v19  ;;  %v2019_v51 = vsel %vm3394_vm9, %v2017_v19, %v2015_v16  ;;  %2136 = vmatpush1.msra.mxu0 %v1759_v29  ;;  %2169 = vmatprep.mubr.f32.mxu0 %v2752_v0  ;;  %vm3410_vm9 = vnez %v3352_v58 }
 0x341   : > { %v2179_v31 = vpop.permute.xlu0 %2178  ;;  %2693 = vmatprep.subr.msk.mxu1 %vm2850_vm1, %v2018_v50  ;;  %vm3399_vm1 = vmmov %vm3392_vm6  ;;  %vm3408_vm6 = vcmp.lt.s32.totalorder %v2840_v4, 111 }
 0x342   : > { %2694 = vmatpush1.msk.msra.mxu1 %vm2855_vm3, %v2019_v51  ;;  %vm3400_vm3 = vcmp.lt.s32.totalorder %v2840_v4, 113  ;;  %vm3407_vm4 = vmmov %vm3399_vm1  ;;  %v2761_v51 = vmov 1966171168  }
 0x343   : > { %v2181_v53 = vpop.permute.xlu1 %2180  ;;  %2695 = vmatmul.mubr.msk.f32.vlgmr.msra.gmra.mxu1 %vm3395_vm12, %v2692_v52  ;;  %2697 = vmatmul.mubr.msk.f32.vlgmr.msra.gmra.mxu0 %vm3396_vm13, %v2696_v28  ;;  %vm3401_vm14 = vmmov %vm3400_vm3  ;;  %vm3411_vm12 = vnez %v3354_v61  ;;  %v2538_v52 = vunpack.c.l.s4 %v2761_v51 }
 0x344   : > { %v2182_v54 = vsel %vm3397_vm5, %v2179_v31, %v2181_v53  ;;  %v2183_v55 = vsel %vm3398_vm0, %v2181_v53, %v2179_v31  ;;  %2255 = vmatprep.mubr.f32.mxu1 %v2752_v0  ;;  %2341 = vmatprep.mubr.f32.mxu0 %v2752_v0  ;;  %vm3409_vm7 = vmmov %vm3408_vm6  ;;  %v2541_v31 = vshrl.u32 %v201_v3, 7  ;;  %vm2554_vm5 = vcmp.lt.s32.totalorder %v201_v3, 256 }
 0x345   : > { %v2265_v15 = vpop.permute.xlu0 %2264  ;;  %2699 = vmatprep.subr.msk.mxu1 %vm2877_vm8, %v2183_v55  ;;  %vm3402_vm8 = vmmov %vm3399_vm1  ;;  %v2539_v28 = vunpack.c.0.s8 %v2538_v52 }
 0x346   : > { %2700 = vmatpush1.msk.msra.mxu1 %vm2881_vm10, %v2182_v54  ;;  %vm3403_vm10 = vcmp.lt.s32.totalorder %v2840_v4, 112  ;;  %vm3412_vm13 = vmmov %vm3399_vm1 }
 0x347   : > { %v2267_v56 = vpop.permute.xlu1 %2266  ;;  %2701 = vmatmul.mubr.msk.f32.vlgmr.msra.gmra.mxu1 %vm3399_vm1, %v2698_v14  ;;  %vm3404_vm11 = vmmov %vm3403_vm10  ;;  %v2542_v54 = vsub.s32 %v2539_v28, %v2541_v31 }
 0x348   : > { %v2268_v57 = vsel %vm3400_vm3, %v2265_v15, %v2267_v56  ;;  %v2269_v59 = vsel %vm3401_vm14, %v2267_v56, %v2265_v15  ;;  %2427 = vmatprep.mubr.f32.mxu1 %v2752_v0 }
 0x349   : > { %v2351_v20 = vpop.permute.xlu0 %2350  ;;  %2703 = vmatprep.subr.msk.mxu0 %vm2981_vm15, %v2269_v59  ;;  %vm3405_vm15 = vcmp.le.s32.totalorder %v2844_v8, 14 }
 0x34a   : > { %2704 = vmatpush1.msk.msra.mxu0 %vm2990_vm2, %v2268_v57  ;;  %vm3406_vm2 = vcmp.le.s32.totalorder %v2846_v10, 14 }
 0x34b   : > { %v2353_v21 = vpop.permute.xlu1 %2352  ;;  %2705 = vmatmul.mubr.msk.f32.vlgmr.msra.gmra.mxu0 %vm3402_vm8, %v2702_v60 }
 0x34c   : > { %v2354_v62 = vsel %vm3403_vm10, %v2351_v20, %v2353_v21  ;;  %v2355_v63 = vsel %vm3404_vm11, %v2353_v21, %v2351_v20  ;;  %2513 = vmatprep.mubr.f32.mxu0 %v2752_v0  ;;  %v2710_v0 = vld [vmem:[%s3312_s3 + $0x40] sm:$0xff] }
 0x34d   : > { %2707 = vmatprep.subr.msk.mxu1 %vm3405_vm15, %v2355_v63  ;;  %v2437_v46 = vpop.permute.xlu0 %2436 }
 0x34e   : > { %2708 = vmatpush1.msk.msra.mxu1 %vm3406_vm2, %v2354_v62 }
 0x34f   : > { %v2439_v49 = vpop.permute.xlu1 %2438  ;;  %2709 = vmatmul.mubr.msk.f32.vlgmr.msra.gmra.mxu1 %vm3407_vm4, %v2706_v1 }
 0x350   : > { %v2440_v2 = vsel %vm3408_vm6, %v2437_v46, %v2439_v49  ;;  %v2441_v5 = vsel %vm3409_vm7, %v2439_v49, %v2437_v46 }
 0x351   : > { %2711 = vmatprep.subr.msk.mxu0 %vm3410_vm9, %v2441_v5 }
 0x352   : > { %2712 = vmatpush1.msk.msra.mxu0 %vm3411_vm12, %v2440_v2 }
 0x353   : > { %2713 = vmatmul.mubr.msk.f32.vlgmr.msra.gmra.mxu0 %vm3412_vm13, %v2710_v0 }
 0x3f7   : > { %v1849_v8 = vpop.f32.mrf.mxu0 }
 0x3f9   : > { %v1851_v10 = vpop.f32.mrf.mxu0 }
 0x3fb   : > { %v1923_v6 = vpop.f32.mrf.mxu1 }
 0x3fc   : > { %v1924_v7 = vadd.f32 %v1923_v6, %v1849_v8 }
 0x3fd   : > { %v1925_v9 = vpop.f32.mrf.mxu1 }
 0x3fe   : > { %v1926_v11 = vadd.f32 %v1925_v9, %v1851_v10 }
 0x3ff   : > { %v2007_v4 = vpop.f32.mrf.mxu0 }
 0x400   : > { %v2012_v12 = vadd.f32 %v2007_v4, %v1924_v7 }
 0x401   : > { %v2009_v13 = vpop.f32.mrf.mxu0 }
 0x402   : > { %v2013_v17 = vadd.f32 %v2009_v13, %v1926_v11 }
 0x403   : > { %v2093_v18 = vpop.f32.mrf.mxu1  ;;  %v2171_v22 = vpop.f32.mrf.mxu0 }
 0x404   : > { %v2098_v23 = vadd.f32 %v2093_v18, %v2012_v12 }
 0x405   : > { %v2095_v58 = vpop.f32.mrf.mxu1  ;;  %v2173_v61 = vpop.f32.mrf.mxu0 }
 0x406   : > { %v2099_v24 = vadd.f32 %v2095_v58, %v2013_v17  ;;  %v2176_v25 = vadd.f32 %v2171_v22, %v2098_v23 }
 0x407   : > { %v2257_v26 = vpop.f32.mrf.mxu1 }
 0x408   : > { %v2177_v27 = vadd.f32 %v2173_v61, %v2099_v24  ;;  %v2262_v29 = vadd.f32 %v2257_v26, %v2176_v25 }
 0x409   : > { %v2259_v30 = vpop.f32.mrf.mxu1 }
 0x40a   : > { %v2263_v33 = vadd.f32 %v2259_v30, %v2177_v27 }
 0x40b   : > { %v2343_v32 = vpop.f32.mrf.mxu0 }
 0x40c   : > { %v2348_v34 = vadd.f32 %v2343_v32, %v2262_v29 }
 0x40d   : > { %v2345_v35 = vpop.f32.mrf.mxu0 }
 0x40e   : > { %v2349_v38 = vadd.f32 %v2345_v35, %v2263_v33 }
 0x40f   : > { %v2429_v36 = vpop.f32.mrf.mxu1 }
 0x410   : > { %v2434_v39 = vadd.f32 %v2429_v36, %v2348_v34 }
 0x411   : > { %v2431_v37 = vpop.f32.mrf.mxu1 }
 0x412   : > { %v2435_v41 = vadd.f32 %v2431_v37, %v2349_v38 }
 0x413   : > { %v2515_v40 = vpop.f32.mrf.mxu0 }
 0x414   : > { %v2520_v42 = vadd.f32 %v2515_v40, %v2434_v39 }
 0x415   : > { %v2517_v43 = vpop.f32.mrf.mxu0 }
 0x416   : > { %v2714_v44 = vmul.f32 -1.442695, %v2520_v42  ;;  %v2521_v45 = vadd.f32 %v2517_v43, %v2435_v41 }
 0x418   : > { %2736 = vpow2.f32 %v2714_v44  ;;  %v2715_v47 = vmul.f32 -1.442695, %v2521_v45 }
 0x41a   : > { %2738 = vpow2.f32 %v2715_v47 }
 0x425   : > { %v2737_v48 = vpop.eup %2736 }
 0x426   : > { %v2528_v16 = vadd.f32 1.0, %v2737_v48 }
 0x427   : > { %v2739_v19 = vpop.eup %2738 }
 0x428   : > { %v2529_v50 = vadd.f32 1.0, %v2739_v19  ;;  %2740 = vrcp.f32 %v2528_v16 }
 0x42a   : > { %2742 = vrcp.f32 %v2529_v50 }
 0x435   : > { %v2741_v53 = vpop.eup %2740 }
 0x437   : > { %v2743_v55 = vpop.eup %2742 }
 0x438   : > { %v2536_v14 = vcombine.low %v2741_v53, %v2743_v55 }
 0x43a   : > { %v2543_v15 = vrot.slane %v2536_v14, %v2542_v54 }
 0x43c   : > { %v2550_v56 = vrot.slane %v2543_v15, %v2542_v54 }
 0x43e   : > { %2556 = vst.msk [vmem:[%s197_s30] sm:$0x3] %vm2554_vm5, %v2550_v56 }
 0x43f PF: > { %s14_s15 = sadd.s32 1, %s2750_s15  }
 0x440   : > { %p11_p4 = scmp.ge.s32.totalorder %s14_s15, 4  }
 0x442   :  { %13 = sbr.rel (!%p11_p4) target bundleno = 1 (0x1), region = 90 }

</bundles_post_ra>
